<compile_context>
chip_gen: v6e
topology: v6e:2x2x1
jax: 0.10.0
libtpu: 0.0.40
codegen_flags: <defaults>
</compile_context>

<pallas_src>
import jax
import jax.numpy as jnp
from jax.experimental import pallas as pl
from jax.experimental.pallas import tpu as pltpu

KS = 3          # kernel_size (module default)
PAD = KS // 2   # 'same' padding


def _ceil_to(v, m):
    return (v + m - 1) // m * m


def _sigmoid(z):
    # exp -> EUP, approx reciprocal -> EUP; keeps gate nonlinearity off the VALU.
    return pl.reciprocal(1.0 + jnp.exp(-z), approx=True)


def _default_num_groups(B):
    """One grid step per TensorCore when detectable; otherwise one step total.

    v5e/v6e have 1 TC -> grid steps are pure per-step overhead, so run the whole
    batch lane-concatenated in a single step.  On v7x (2 TCs) keep 2 steps so
    the 'parallel' grid axis feeds both cores.
    """
    n_tc = 1
    try:
        n_tc = int(getattr(jax.devices()[0], "num_cores", 1) or 1)
    except Exception:
        n_tc = 1
    g = max(1, min(B, n_tc))
    while B % g:
        g -= 1
    return g


def _make_gru_kernel(Cin_p, Ch_p, H, W, Bt):
    """Builds the kernel closure. Bt batch elements are lane-concatenated per step."""
    Wp = W + 2 * PAD
    Hp = H + 2 * PAD
    NEXT = H * Wp                    # per-image extended row length (2 junk cols/row)
    NB = Hp * Wp + 2                 # per-image padded-flat length (+2 so every tap fits)
    OFF = PAD * Wp + PAD             # flat offset of the centre tap of output pixel (0,0)
    offs = [dh * Wp + dw for dh in range(KS) for dw in range(KS)]
    MAXOFF = max(offs)

    LOUT = _ceil_to((Bt - 1) * NB + NEXT, 128)   # matmul / store lane extent
    LBUF = LOUT + MAXOFF                         # padded-flat buffer lane extent

    # Static invariants the halo/junk-column layout trick relies on (PAD=1, KS=3).
    assert MAXOFF == NB - NEXT == 2 * Wp + 2
    assert OFF + LOUT <= LBUF
    assert LOUT % 128 == 0 and LOUT >= (Bt - 1) * NB + NEXT
    assert LBUF >= Bt * NB

    def taps(a):
        # Each 3x3 tap is a contiguous lane slice of the padded-flat buffer.
        return [a[:, o:o + LOUT] for o in offs]

    def kernel(x_ref, h_ref, w1_ref, w2_ref, b_ref, out_ref, rh_ref):
        x_b = x_ref[0]                           # (Cin_p, LBUF) bf16
        h_f = h_ref[0]                           # (Ch_p,  LBUF) f32 (state math stays f32)
        h_b = h_f.astype(jnp.bfloat16)

        # im2col patches of x and h stacked on sublanes in one concat:
        # rows [0:9*Cin_p] = 9 x-taps, rows [9*Cin_p:] = 9 h-taps.
        p_xh = jnp.concatenate(taps(x_b) + taps(h_b), axis=0)   # (9*(Cin_p+Ch_p), LOUT)

        # Fused MXU matmul #1: rows [0:2Ch_p] = gate conv (x & h contributions),
        # rows [2Ch_p:3Ch_p] = candidate conv x-contribution (zero weights on h cols).
        acc1 = jnp.dot(w1_ref[...], p_xh,
                       preferred_element_type=jnp.float32) + b_ref[...]   # (3Ch_p, LOUT) f32

        gates = _sigmoid(acc1[:2 * Ch_p])        # one EUP pass over both gates
        reset = gates[:Ch_p]                     # (Ch_p, LOUT)
        update = gates[Ch_p:]                    # (Ch_p, LOUT)

        # h aligned to the extended output layout; its junk columns alias the
        # zero halo of the padded lattice, so reset*h stays exactly zero there.
        h_int = h_f[:, OFF:OFF + LOUT]           # (Ch_p, LOUT) f32
        rh = (reset * h_int).astype(jnp.bfloat16)

        # Place reset*h back into padded-flat layout: one contiguous interior
        # store; only the small halo prefix/suffix is re-zeroed.
        rh_ref[:, :OFF] = jnp.zeros((Ch_p, OFF), jnp.bfloat16)
        rh_ref[:, OFF + LOUT:] = jnp.zeros((Ch_p, LBUF - OFF - LOUT), jnp.bfloat16)
        rh_ref[:, OFF:OFF + LOUT] = rh
        p_rh = jnp.concatenate(taps(rh_ref[...]), axis=0)        # (9*Ch_p, LOUT) bf16

        # MXU matmul #2: candidate conv contribution from reset*h.
        cand = acc1[2 * Ch_p:] + jnp.dot(w2_ref[...], p_rh,
                                         preferred_element_type=jnp.float32)
        cnm = jnp.tanh(cand)

        # GRU state update; LOUT is a multiple of 128 -> unmasked wide stores.
        out_ref[0] = (1.0 - update) * h_int + update * cnm

    return kernel, NB, NEXT, LOUT, LBUF


def conv2d_gru_cell(x_nchw, h_nchw, w_gates, b_gates, w_cand, b_cand,
                    num_groups=None):
    """One Conv2dGRUCell.forward step.

    x_nchw : (B, Cin, H, W) float32
    h_nchw : (B, Ch,  H, W) float32   (the module's self.h)
    w_gates: (KS, KS, Cin+Ch, 2*Ch) HWIO, b_gates: (2*Ch,)
    w_cand : (KS, KS, Cin+Ch, Ch)   HWIO, b_cand : (Ch,)
    returns: new hidden state, NCHW (B, Ch, H, W)
    """
    B, Cin, H, W = x_nchw.shape
    Ch = h_nchw.shape[1]
    Wp, Hp = W + 2 * PAD, H + 2 * PAD
    Cin_p, Ch_p = _ceil_to(Cin, 8), _ceil_to(Ch, 8)
    f32, bf16 = jnp.float32, jnp.bfloat16

    if num_groups is None:
        num_groups = _default_num_groups(B)
    assert B % num_groups == 0, "num_groups must divide B"
    G = num_groups
    Bt = B // G

    kernel, NB, NEXT, LOUT, LBUF = _make_gru_kernel(Cin_p, Ch_p, H, W, Bt)

    def pad_flat(a, Cp, dtype):
        # (B, Cg, H, W) -> (G, Cp, LBUF): zero channel pad, zero spatial halo,
        # per-image flatten (+2 slack lanes), lane-concat the Bt images of a group.
        Cg = a.shape[1]
        a = jnp.pad(a.astype(f32), ((0, 0), (0, Cp - Cg), (PAD, PAD), (PAD, PAD)))
        a = a.reshape(B, Cp, Hp * Wp)
        a = jnp.pad(a, ((0, 0), (0, 0), (0, NB - Hp * Wp)))
        a = a.reshape(G, Bt, Cp, NB).transpose(0, 2, 1, 3).reshape(G, Cp, Bt * NB)
        a = jnp.pad(a, ((0, 0), (0, 0), (0, LBUF - Bt * NB)))
        return a.astype(dtype)

    x_p = pad_flat(x_nchw, Cin_p, bf16)      # (G, Cin_p, LBUF) bf16 (MXU operand)
    h_p = pad_flat(h_nchw, Ch_p, f32)        # (G, Ch_p,  LBUF) f32  (state kept f32)

    def to_mat(w, Ci_p, Co_p):
        # HWIO slice (3,3,Ci,Co) -> (Co_p, 9*Ci_p); column = (dh*3+dw)*Ci_p + ci.
        kh, kw, ci, co = w.shape
        w = jnp.pad(w.astype(f32), ((0, 0), (0, 0), (0, Ci_p - ci), (0, Co_p - co)))
        return w.reshape(kh * kw * Ci_p, Co_p).T

    wg, wc = w_gates.astype(f32), w_cand.astype(f32)
    # torch.split(conv_gates(.), h_dim, dim=1): gamma = first Ch out-channels.
    gamma_x = to_mat(wg[:, :, :Cin, :Ch], Cin_p, Ch_p)
    beta_x = to_mat(wg[:, :, :Cin, Ch:], Cin_p, Ch_p)
    cand_x = to_mat(wc[:, :, :Cin, :], Cin_p, Ch_p)
    gamma_h = to_mat(wg[:, :, Cin:, :Ch], Ch_p, Ch_p)
    beta_h = to_mat(wg[:, :, Cin:, Ch:], Ch_p, Ch_p)
    cand_h = to_mat(wc[:, :, Cin:, :], Ch_p, Ch_p)

    zeros_h = jnp.zeros((Ch_p, KS * KS * Ch_p), f32)
    # Fused weight block: gate rows use both x and h columns; candidate rows use
    # only the x columns (its h-side input is reset*h, handled by the 2nd matmul).
    w1 = jnp.concatenate([
        jnp.concatenate([gamma_x, gamma_h], axis=1),
        jnp.concatenate([beta_x, beta_h], axis=1),
        jnp.concatenate([cand_x, zeros_h], axis=1),
    ], axis=0).astype(bf16)                                  # (3Ch_p, 9*(Cin_p+Ch_p))
    w2 = cand_h.astype(bf16)                                 # (Ch_p, 9*Ch_p)

    def pad_vec(v, n):
        return jnp.pad(v.astype(f32), (0, n - v.shape[0]))

    b_all = jnp.concatenate([pad_vec(b_gates[:Ch], Ch_p),
                             pad_vec(b_gates[Ch:], Ch_p),
                             pad_vec(b_cand, Ch_p)]).reshape(3 * Ch_p, 1)

    # Weight/bias blocks have constant index maps -> not re-DMA'd per grid step.
    out_ext = pl.pallas_call(
        kernel,
        out_shape=jax.ShapeDtypeStruct((G, Ch_p, LOUT), f32),
        grid_spec=pltpu.PrefetchScalarGridSpec(
            num_scalar_prefetch=0,
            grid=(G,),
            in_specs=[
                pl.BlockSpec((1, Cin_p, LBUF), lambda g: (g, 0, 0)),
                pl.BlockSpec((1, Ch_p, LBUF), lambda g: (g, 0, 0)),
                pl.BlockSpec((3 * Ch_p, KS * KS * (Cin_p + Ch_p)), lambda g: (0, 0)),
                pl.BlockSpec((Ch_p, KS * KS * Ch_p), lambda g: (0, 0)),
                pl.BlockSpec((3 * Ch_p, 1), lambda g: (0, 0)),
            ],
            out_specs=pl.BlockSpec((1, Ch_p, LOUT), lambda g: (g, 0, 0)),
            scratch_shapes=[pltpu.VMEM((Ch_p, LBUF), bf16)],
        ),
        compiler_params=pltpu.CompilerParams(
            dimension_semantics=("parallel",)),
    )(x_p, h_p, w1, w2, b_all)

    # Gather each image's extended block, drop padded channels and junk columns.
    parts = [out_ext[:, :Ch, bi * NB: bi * NB + NEXT] for bi in range(Bt)]
    out = jnp.stack(parts, axis=1).reshape(B, Ch, H, Wp)[..., :W]
    return out


def reference_nchw(x, h, w_gates, b_gates, w_cand, b_cand):
    """Pure-JAX reference (NCHW inputs, HWIO weights) for correctness checking."""
    Ch = h.shape[1]

    def conv(inp, w, b):
        out = jax.lax.conv_general_dilated(
            inp, w, window_strides=(1, 1), padding="SAME",
            dimension_numbers=("NCHW", "HWIO", "NCHW"),
            precision=jax.lax.Precision.HIGHEST)
        return out + b.reshape(1, -1, 1, 1)

    comb = jnp.concatenate([x, h], axis=1)
    g = conv(comb, w_gates, b_gates)
    reset = jax.nn.sigmoid(g[:, :Ch])
    update = jax.nn.sigmoid(g[:, Ch:])
    comb2 = jnp.concatenate([x, reset * h], axis=1)
    cnm = jnp.tanh(conv(comb2, w_cand, b_cand))
    return (1.0 - update) * h + update * cnm


if __name__ == "__main__":
    B, Cin, Ch, H, W = 2, 4, 8, 16, 16
    C = Cin + Ch

    key = jax.random.PRNGKey(0)
    k = jax.random.split(key, 6)
    x = jax.random.normal(k[0], (B, Cin, H, W), jnp.float32)
    h0 = jax.random.normal(k[1], (B, Ch, H, W), jnp.float32)   # self.h (reset_h uses randn)
    # Deterministic synthetic parameters (Conv2d weight/bias shapes from __init__), HWIO.
    w_gates = jax.random.normal(k[2], (KS, KS, C, 2 * Ch), jnp.float32) * 0.1
    b_gates = jax.random.normal(k[3], (2 * Ch,), jnp.float32) * 0.1
    w_cand = jax.random.normal(k[4], (KS, KS, C, Ch), jnp.float32) * 0.1
    b_cand = jax.random.normal(k[5], (Ch,), jnp.float32) * 0.1

    h_new = conv2d_gru_cell(x, h0, w_gates, b_gates, w_cand, b_cand)
    h_new = jax.block_until_ready(h_new)

    ref = reference_nchw(x, h0, w_gates, b_gates, w_cand, b_cand)

    assert h_new.shape == (B, Ch, H, W)
    max_err = float(jnp.max(jnp.abs(h_new - ref)))
    assert jnp.allclose(h_new, ref, atol=2e-2, rtol=2e-2), max_err
    print("KERNEL_OK")
</pallas_src>

<mosaic_0001>
module attributes {stable_mosaic.version = 11 : i64} {
  func.func @kernel(%arg0: i32, %arg1: memref<1x8x678xbf16, #tpu.memory_space<vmem>>, %arg2: memref<1x8x678xf32, #tpu.memory_space<vmem>>, %arg3: memref<24x144xbf16, #tpu.memory_space<vmem>>, %arg4: memref<8x72xbf16, #tpu.memory_space<vmem>>, %arg5: memref<24x1xf32, #tpu.memory_space<vmem>>, %arg6: memref<1x8x640xf32, #tpu.memory_space<vmem>>, %arg7: memref<8x678xbf16, #tpu.memory_space<vmem>>) attributes {dimension_semantics = [#tpu.dimension_semantics<parallel>], iteration_bounds = array<i64: 1>, scalar_prefetch = 0 : i64, scratch_operands = 1 : i64, tpu.core_type = #tpu.core_type<tc>, window_params = [{transform_indices = @transform_0, window_bounds = array<i64: 1, 8, 678>}, {transform_indices = @transform_1, window_bounds = array<i64: 1, 8, 678>}, {pipeline_mode = #tpu.pipeline_mode<synchronous>, transform_indices = @transform_2, window_bounds = array<i64: 24, 144>}, {pipeline_mode = #tpu.pipeline_mode<synchronous>, transform_indices = @transform_3, window_bounds = array<i64: 8, 72>}, {pipeline_mode = #tpu.pipeline_mode<synchronous>, transform_indices = @transform_4, window_bounds = array<i64: 24, 1>}, {transform_indices = @transform_5, window_bounds = array<i64: 1, 8, 640>}]} {
    %c0 = arith.constant 0 : index
    %c0_0 = arith.constant 0 : index
    %c0_1 = arith.constant 0 : index
    %0 = vector.load %arg1[%c0, %c0_0, %c0_1] : memref<1x8x678xbf16, #tpu.memory_space<vmem>>, vector<1x8x678xbf16>
    %1 = vector.shape_cast %0 : vector<1x8x678xbf16> to vector<8x678xbf16>
    %c0_2 = arith.constant 0 : index
    %c0_3 = arith.constant 0 : index
    %c0_4 = arith.constant 0 : index
    %2 = vector.load %arg2[%c0_2, %c0_3, %c0_4] : memref<1x8x678xf32, #tpu.memory_space<vmem>>, vector<1x8x678xf32>
    %3 = vector.shape_cast %2 : vector<1x8x678xf32> to vector<8x678xf32>
    %4 = arith.truncf %3 : vector<8x678xf32> to vector<8x678xbf16>
    %5 = vector.extract_strided_slice %1 {offsets = [0, 0], sizes = [8, 640], strides = [1, 1]} : vector<8x678xbf16> to vector<8x640xbf16>
    %6 = vector.extract_strided_slice %1 {offsets = [0, 1], sizes = [8, 640], strides = [1, 1]} : vector<8x678xbf16> to vector<8x640xbf16>
    %7 = vector.extract_strided_slice %1 {offsets = [0, 2], sizes = [8, 640], strides = [1, 1]} : vector<8x678xbf16> to vector<8x640xbf16>
    %8 = vector.extract_strided_slice %1 {offsets = [0, 18], sizes = [8, 640], strides = [1, 1]} : vector<8x678xbf16> to vector<8x640xbf16>
    %9 = vector.extract_strided_slice %1 {offsets = [0, 19], sizes = [8, 640], strides = [1, 1]} : vector<8x678xbf16> to vector<8x640xbf16>
    %10 = vector.extract_strided_slice %1 {offsets = [0, 20], sizes = [8, 640], strides = [1, 1]} : vector<8x678xbf16> to vector<8x640xbf16>
    %11 = vector.extract_strided_slice %1 {offsets = [0, 36], sizes = [8, 640], strides = [1, 1]} : vector<8x678xbf16> to vector<8x640xbf16>
    %12 = vector.extract_strided_slice %1 {offsets = [0, 37], sizes = [8, 640], strides = [1, 1]} : vector<8x678xbf16> to vector<8x640xbf16>
    %13 = vector.extract_strided_slice %1 {offsets = [0, 38], sizes = [8, 640], strides = [1, 1]} : vector<8x678xbf16> to vector<8x640xbf16>
    %14 = vector.extract_strided_slice %4 {offsets = [0, 0], sizes = [8, 640], strides = [1, 1]} : vector<8x678xbf16> to vector<8x640xbf16>
    %15 = vector.extract_strided_slice %4 {offsets = [0, 1], sizes = [8, 640], strides = [1, 1]} : vector<8x678xbf16> to vector<8x640xbf16>
    %16 = vector.extract_strided_slice %4 {offsets = [0, 2], sizes = [8, 640], strides = [1, 1]} : vector<8x678xbf16> to vector<8x640xbf16>
    %17 = vector.extract_strided_slice %4 {offsets = [0, 18], sizes = [8, 640], strides = [1, 1]} : vector<8x678xbf16> to vector<8x640xbf16>
    %18 = vector.extract_strided_slice %4 {offsets = [0, 19], sizes = [8, 640], strides = [1, 1]} : vector<8x678xbf16> to vector<8x640xbf16>
    %19 = vector.extract_strided_slice %4 {offsets = [0, 20], sizes = [8, 640], strides = [1, 1]} : vector<8x678xbf16> to vector<8x640xbf16>
    %20 = vector.extract_strided_slice %4 {offsets = [0, 36], sizes = [8, 640], strides = [1, 1]} : vector<8x678xbf16> to vector<8x640xbf16>
    %21 = vector.extract_strided_slice %4 {offsets = [0, 37], sizes = [8, 640], strides = [1, 1]} : vector<8x678xbf16> to vector<8x640xbf16>
    %22 = vector.extract_strided_slice %4 {offsets = [0, 38], sizes = [8, 640], strides = [1, 1]} : vector<8x678xbf16> to vector<8x640xbf16>
    %23 = tpu.concatenate %5, %6, %7, %8, %9, %10, %11, %12, %13, %14, %15, %16, %17, %18, %19, %20 in 0 : vector<8x640xbf16>, vector<8x640xbf16>, vector<8x640xbf16>, vector<8x640xbf16>, vector<8x640xbf16>, vector<8x640xbf16>, vector<8x640xbf16>, vector<8x640xbf16>, vector<8x640xbf16>, vector<8x640xbf16>, vector<8x640xbf16>, vector<8x640xbf16>, vector<8x640xbf16>, vector<8x640xbf16>, vector<8x640xbf16>, vector<8x640xbf16> -> vector<128x640xbf16>
    %24 = tpu.concatenate %21, %22 in 0 : vector<8x640xbf16>, vector<8x640xbf16> -> vector<16x640xbf16>
    %25 = tpu.concatenate %23, %24 in 0 : vector<128x640xbf16>, vector<16x640xbf16> -> vector<144x640xbf16>
    %c0_5 = arith.constant 0 : index
    %c0_6 = arith.constant 0 : index
    %26 = vector.load %arg3[%c0_5, %c0_6] : memref<24x144xbf16, #tpu.memory_space<vmem>>, vector<24x144xbf16>
    %cst = arith.constant dense<0.000000e+00> : vector<24x640xf32>
    %27 = tpu.matmul %26, %25, %cst {dimension_numbers = #tpu.dot_dimension_numbers<[1], [0], [0], [1], [0, 0, 1, 1], [], []>} : vector<24x144xbf16>, vector<144x640xbf16>, vector<24x640xf32> -> vector<24x640xf32>
    %c0_7 = arith.constant 0 : index
    %c0_8 = arith.constant 0 : index
    %28 = vector.load %arg5[%c0_7, %c0_8] : memref<24x1xf32, #tpu.memory_space<vmem>>, vector<24x1xf32>
    %29 = vector.broadcast %28 : vector<24x1xf32> to vector<24x640xf32>
    %30 = arith.addf %27, %29 : vector<24x640xf32>
    %31 = vector.extract_strided_slice %30 {offsets = [0, 0], sizes = [16, 640], strides = [1, 1]} : vector<24x640xf32> to vector<16x640xf32>
    %cst_9 = arith.constant 0.000000e+00 : f32
    %32 = vector.broadcast %cst_9 : f32 to vector<16x640xf32>
    %33 = arith.subf %32, %31 : vector<16x640xf32>
    %34 = math.exp %33 : vector<16x640xf32>
    %cst_10 = arith.constant 1.000000e+00 : f32
    %35 = vector.broadcast %cst_10 : f32 to vector<16x640xf32>
    %36 = arith.addf %35, %34 : vector<16x640xf32>
    %37 = tpu.reciprocal %36 {approx = true} : vector<16x640xf32> -> vector<16x640xf32>
    %38 = vector.extract_strided_slice %37 {offsets = [0, 0], sizes = [8, 640], strides = [1, 1]} : vector<16x640xf32> to vector<8x640xf32>
    %39 = vector.extract_strided_slice %37 {offsets = [8, 0], sizes = [8, 640], strides = [1, 1]} : vector<16x640xf32> to vector<8x640xf32>
    %40 = vector.extract_strided_slice %3 {offsets = [0, 19], sizes = [8, 640], strides = [1, 1]} : vector<8x678xf32> to vector<8x640xf32>
    %41 = arith.mulf %38, %40 : vector<8x640xf32>
    %42 = arith.truncf %41 : vector<8x640xf32> to vector<8x640xbf16>
    %cst_11 = arith.constant 0.000000e+00 : bf16
    %43 = vector.broadcast %cst_11 : bf16 to vector<8x19xbf16>
    %c0_12 = arith.constant 0 : index
    %c0_13 = arith.constant 0 : index
    %44 = vector.load %arg7[%c0_12, %c0_13] : memref<8x678xbf16, #tpu.memory_space<vmem>>, vector<8x19xbf16>
    tpu.vector_store %arg7[%c0_12, %c0_13], %43 {strides = array<i32>} : memref<8x678xbf16, #tpu.memory_space<vmem>>, vector<8x19xbf16>,
    %cst_14 = arith.constant 0.000000e+00 : bf16
    %45 = vector.broadcast %cst_14 : bf16 to vector<8x19xbf16>
    %c0_15 = arith.constant 0 : index
    %c659 = arith.constant 659 : index
    %46 = vector.load %arg7[%c0_15, %c659] : memref<8x678xbf16, #tpu.memory_space<vmem>>, vector<8x19xbf16>
    tpu.vector_store %arg7[%c0_15, %c659], %45 {strides = array<i32>} : memref<8x678xbf16, #tpu.memory_space<vmem>>, vector<8x19xbf16>,
    %c0_16 = arith.constant 0 : index
    %c19 = arith.constant 19 : index
    %47 = vector.load %arg7[%c0_16, %c19] : memref<8x678xbf16, #tpu.memory_space<vmem>>, vector<8x640xbf16>
    tpu.vector_store %arg7[%c0_16, %c19], %42 {strides = array<i32>} : memref<8x678xbf16, #tpu.memory_space<vmem>>, vector<8x640xbf16>,
    %c0_17 = arith.constant 0 : index
    %c0_18 = arith.constant 0 : index
    %48 = vector.load %arg7[%c0_17, %c0_18] : memref<8x678xbf16, #tpu.memory_space<vmem>>, vector<8x678xbf16>
    %49 = vector.extract_strided_slice %48 {offsets = [0, 0], sizes = [8, 640], strides = [1, 1]} : vector<8x678xbf16> to vector<8x640xbf16>
    %50 = vector.extract_strided_slice %48 {offsets = [0, 1], sizes = [8, 640], strides = [1, 1]} : vector<8x678xbf16> to vector<8x640xbf16>
    %51 = vector.extract_strided_slice %48 {offsets = [0, 2], sizes = [8, 640], strides = [1, 1]} : vector<8x678xbf16> to vector<8x640xbf16>
    %52 = vector.extract_strided_slice %48 {offsets = [0, 18], sizes = [8, 640], strides = [1, 1]} : vector<8x678xbf16> to vector<8x640xbf16>
    %53 = vector.extract_strided_slice %48 {offsets = [0, 19], sizes = [8, 640], strides = [1, 1]} : vector<8x678xbf16> to vector<8x640xbf16>
    %54 = vector.extract_strided_slice %48 {offsets = [0, 20], sizes = [8, 640], strides = [1, 1]} : vector<8x678xbf16> to vector<8x640xbf16>
    %55 = vector.extract_strided_slice %48 {offsets = [0, 36], sizes = [8, 640], strides = [1, 1]} : vector<8x678xbf16> to vector<8x640xbf16>
    %56 = vector.extract_strided_slice %48 {offsets = [0, 37], sizes = [8, 640], strides = [1, 1]} : vector<8x678xbf16> to vector<8x640xbf16>
    %57 = vector.extract_strided_slice %48 {offsets = [0, 38], sizes = [8, 640], strides = [1, 1]} : vector<8x678xbf16> to vector<8x640xbf16>
    %58 = tpu.concatenate %49, %50, %51, %52, %53, %54, %55, %56, %57 in 0 : vector<8x640xbf16>, vector<8x640xbf16>, vector<8x640xbf16>, vector<8x640xbf16>, vector<8x640xbf16>, vector<8x640xbf16>, vector<8x640xbf16>, vector<8x640xbf16>, vector<8x640xbf16> -> vector<72x640xbf16>
    %59 = vector.extract_strided_slice %30 {offsets = [16, 0], sizes = [8, 640], strides = [1, 1]} : vector<24x640xf32> to vector<8x640xf32>
    %c0_19 = arith.constant 0 : index
    %c0_20 = arith.constant 0 : index
    %60 = vector.load %arg4[%c0_19, %c0_20] : memref<8x72xbf16, #tpu.memory_space<vmem>>, vector<8x72xbf16>
    %cst_21 = arith.constant dense<0.000000e+00> : vector<8x640xf32>
    %61 = tpu.matmul %60, %58, %cst_21 {dimension_numbers = #tpu.dot_dimension_numbers<[1], [0], [0], [1], [0, 0, 1, 1], [], []>} : vector<8x72xbf16>, vector<72x640xbf16>, vector<8x640xf32> -> vector<8x640xf32>
    %62 = arith.addf %59, %61 : vector<8x640xf32>
    %63 = math.tanh %62 : vector<8x640xf32>
    %cst_22 = arith.constant 1.000000e+00 : f32
    %64 = vector.broadcast %cst_22 : f32 to vector<8x640xf32>
    %65 = arith.subf %64, %39 : vector<8x640xf32>
    %66 = arith.mulf %65, %40 : vector<8x640xf32>
    %67 = arith.mulf %39, %63 : vector<8x640xf32>
    %68 = arith.addf %66, %67 : vector<8x640xf32>
    %c0_23 = arith.constant 0 : index
    %c0_24 = arith.constant 0 : index
    %c0_25 = arith.constant 0 : index
    %69 = vector.load %arg6[%c0_23, %c0_24, %c0_25] : memref<1x8x640xf32, #tpu.memory_space<vmem>>, vector<1x8x640xf32>
    %70 = vector.shape_cast %69 : vector<1x8x640xf32> to vector<8x640xf32>
    %71 = vector.shape_cast %68 : vector<8x640xf32> to vector<1x8x640xf32>
    tpu.vector_store %arg6[%c0_23, %c0_24, %c0_25], %71 {strides = array<i32>} : memref<1x8x640xf32, #tpu.memory_space<vmem>>, vector<1x8x640xf32>,
    return
  }
  func.func @transform_0(%arg0: i32) -> (i32, i32, i32) {
    %c0_i32 = arith.constant 0 : i32
    %c0_i32_0 = arith.constant 0 : i32
    %c0_i32_1 = arith.constant 0 : i32
    return %arg0, %c0_i32, %c0_i32_0 : i32, i32, i32
  }
  func.func @transform_1(%arg0: i32) -> (i32, i32, i32) {
    %c0_i32 = arith.constant 0 : i32
    %c0_i32_0 = arith.constant 0 : i32
    %c0_i32_1 = arith.constant 0 : i32
    return %arg0, %c0_i32, %c0_i32_0 : i32, i32, i32
  }
  func.func @transform_2(%arg0: i32) -> (i32, i32) {
    %c0_i32 = arith.constant 0 : i32
    %c0_i32_0 = arith.constant 0 : i32
    %c0_i32_1 = arith.constant 0 : i32
    return %c0_i32, %c0_i32_0 : i32, i32
  }
  func.func @transform_3(%arg0: i32) -> (i32, i32) {
    %c0_i32 = arith.constant 0 : i32
    %c0_i32_0 = arith.constant 0 : i32
    %c0_i32_1 = arith.constant 0 : i32
    return %c0_i32, %c0_i32_0 : i32, i32
  }
  func.func @transform_4(%arg0: i32) -> (i32, i32) {
    %c0_i32 = arith.constant 0 : i32
    %c0_i32_0 = arith.constant 0 : i32
    %c0_i32_1 = arith.constant 0 : i32
    return %c0_i32, %c0_i32_0 : i32, i32
  }
  func.func @transform_5(%arg0: i32) -> (i32, i32, i32) {
    %c0_i32 = arith.constant 0 : i32
    %c0_i32_0 = arith.constant 0 : i32
    %c0_i32_1 = arith.constant 0 : i32
    return %arg0, %c0_i32, %c0_i32_0 : i32, i32, i32
  }
}

</mosaic_0001>

<bundles_post_ra>
// kernel: tpu_custom_call.1
= control target key start
LH: loop header
LB: loop body
LE: loop exit
PB: predicated region body
PF: predicated region fallthrough
CT: control target
= control target key end

     0   :  { %10 = vsyncpa [#allocation4], 0  ;;  %s2434_s0 = inlined_call_operand.vmem [shape: bf16[1,8,678], index: 0, kind: input, shape index: {}]   ;;  %s2435_s1 = inlined_call_operand.hbm [shape: f32[1,8,678], index: 1, kind: input, shape index: {}]   ;;  %s2436_s2 = inlined_call_operand.hbm [shape: bf16[24,144], index: 2, kind: input, shape index: {}]   ;;  %s2437_s3 = inlined_call_operand.vmem [shape: bf16[8,72], index: 3, kind: input, shape index: {}]   ;;  %s2438_s4 = inlined_call_operand.vmem [shape: f32[24,1], index: 4, kind: input, shape index: {}]   ;;  %s2439_s5 = inlined_call_operand.hbm [shape: f32[1,8,640], index: 5, kind: output, shape index: {}]  }
   0x1   :  { %11 = vsyncpa [#allocation7], 0 }
   0x2   :  { %12 = vsyncpa [#allocation5], 0  ;;  %s1516_s18 = smov [#allocation3]   ;;  %s1517_s20 = smov [#allocation6]  }
   0x3   :  { %s21_s19 = sshll.u32 %s1516_s18, 4  ;;  %s30_s21 = sshll.u32 %s1517_s20, 4  ;;  %s22_s19 = int_to_ptr.vmem [resolvable:$true] %s21_s19  ;;  %s31_s21 = int_to_ptr.vmem [resolvable:$true] %s30_s21 }
   0x4   :  { %s1458_s22 = scalar_lea.vmem %s22_s19, 768  ;;  %p1463_p1 = scmp.lt.s32.totalorder %s22_s19, %s22_s19 }
   0x5   :  { %p1459_p0 = scmp.ne.s32.totalorder %s22_s19, %s1458_s22  ;;  %p1464_p2 = scmp.lt.s32.totalorder %s1458_s22, %s1458_s22 }
   0x7   :  { %p1465_p3 = por %p1464_p2, %p1463_p1 }
   0x9   :  { %p1466_p4 = pnand %p1465_p3, %p1459_p0 }
   0xb   :  { %1469 = shalt.err (!%p1466_p4)
}
   0xc   :  { %24 = dma.hbm_to_vmem [thread:$0]  %s2435_s1, 768, %s22_s19, [#allocation4]  }
   0xd   :  { %s1478_s25 = scalar_lea.vmem %s31_s21, 384  ;;  %p1483_p6 = scmp.lt.s32.totalorder %s31_s21, %s31_s21 }
   0xe   :  { %p1479_p5 = scmp.ne.s32.totalorder %s31_s21, %s1478_s25  ;;  %p1484_p7 = scmp.lt.s32.totalorder %s1478_s25, %s1478_s25 }
  0x10   :  { %p1485_p8 = por %p1484_p7, %p1483_p6 }
  0x12   :  { %p1486_p9 = pnand %p1485_p8, %p1479_p5 }
  0x14   :  { %1489 = shalt.err (!%p1486_p9)
}
  0x15   :  { %s1518_s26 = smov 128   ;;  %s1519_s27 = smov 8  }
  0x16   :  { %36 = dma.hbm_to_vmem [thread:$0]  %s2436_s2, 384, %s31_s21, [#allocation7], %s1518_s26, %s1518_s26, %s1519_s27  }
  0x17   :  { %1510 = dma.done.wait [#allocation4], 768  }
  0x18   :  { %1511 = vsyncadd [#allocation4], 4294966528 }
  0x19   :  { %1512 = dma.done.wait [#allocation7], 384  }
  0x1a   :  { %1513 = vsyncadd [#allocation7], 4294966912  ;;  %v1569_v0 = vld [vmem:[#allocation3 + $0x10] sm:$0xff]  ;;  %v1571_v1 = vld [vmem:[#allocation3 + $0x8] sm:$0xff]  ;;  %s1520_s1 = smov 108   ;;  %s1521_s2 = smov 127  }
  0x1b   :  { %v1573_v2 = vld [vmem:[#allocation3 + $0x18] sm:$0xff]  ;;  %v1577_v3 = vpack.c.bf16 %v1569_v0, %v1569_v0  ;;  %v1581_v4 = vpack.c.bf16 %v1571_v1, %v1571_v1  ;;  %v1587_v6 = vld [vmem:[#allocation3] sm:$0xff]  ;;  %v1605_v11 = vld [vmem:[#allocation3 + $0x28] sm:$0xff]  ;;  %s1522_s30 = smov 92   ;;  %s1523_s6 = smov 110   ;;  %vm90_vm0 = vcmask 1039360  }
  0x1c   :  { %v1585_v5 = vpack.c.bf16 %v1573_v2, %v1573_v2  ;;  %v1601_v9 = vpack.c.bf16 %v1587_v6, %v1587_v6  ;;  %v1603_v10 = vld [vmem:[#allocation3 + $0x20] sm:$0xff]  ;;  %v1623_v15 = vpack.c.bf16 %v1605_v11, %v1605_v11  ;;  %s1524_s7 = smov 109   ;;  %s1525_s8 = smov 126   ;;  %v49_v18 = vld [vmem:[%s2434_s0 + $0x8] sm:$0xff]  ;;  %v48_v19 = vld [vmem:[%s2434_s0] sm:$0xff]  ;;  %vm162_vm1 = vcmask 883712  }
  0x1d   :  { %306 = vrot.lane.b32.xlu1 %v1577_v3, %s1520_s1  ;;  %304 = vrot.lane.b32.xlu0 %v1581_v4, %s1520_s1  ;;  %v1597_v8 = vrot.slane %v1581_v4, 4  ;;  %v1612_v12 = vrot.slane %v1577_v3, 4  ;;  %v1619_v14 = vpack.c.bf16 %v1603_v10, %v1603_v10  ;;  %v1677_v20 = vcombine.low %v49_v18, %v49_v18  ;;  %s1526_s13 = smov 90   ;;  %s1527_s14 = smov 91   ;;  %v1752_v24 = vld [vmem:[%s2434_s0 + $0x10] sm:$0xff] }
  0x1e   :  { %v1594_v7 = vrot.slane %v1585_v5, 4  ;;  %v1615_v13 = vrot.slane %v1601_v9, 4  ;;  %v1633_v17 = vrot.slane %v1623_v15, 4  ;;  %v1679_v21 = vcombine.high %v48_v19, %v48_v19  ;;  %v1802_v43 = vld [vmem:[#allocation6 + $0x4] ss:$8 sps:$4 sm:$0xff]   ;;  %s1529_s18 = smov 19  }
  0x1f   :  { %v1630_v16 = vrot.slane %v1619_v14, 4  ;;  %v1685_v22 = vcombine.low %v48_v19, %v48_v19  ;;  %v1747_v23 = vcombine.high %v49_v18, %v49_v18  ;;  %v1760_v25 = vcombine.low %v1752_v24, %v1752_v24 }
  0x20   :  { %vm336_vm2 = vcmask 1043456   ;;  %vm180_vm3 = vcmask 752640   ;;  %vm596_vm4 = vcmask 130048   ;;  %v1528_v49 = vmov 0  }
  0x21   :  { %503 = vrot.lane.b32.xlu1 %v1594_v7, %s1521_s2  ;;  %499 = vrot.lane.b32.xlu0 %v1597_v8, %s1521_s2  ;;  %vm126_vm5 = vcmask 900096   ;;  %vm144_vm6 = vcmask 891904   ;;  %vm108_vm7 = vcmask 1031168   ;;  %vm216_vm8 = vcmask 736256  }
  0x22   :  { %1323 = vmatprep.mubr.msk.bf16.mxu0 %vm596_vm4, %v1802_v43  ;;  %1325 = vmatprep.mubr.msk.bf16.mxu1 %vm596_vm4, %v1802_v43  ;;  %vm198_vm9 = vcmask 744448   ;;  %vm842_vm10 = vcmask 150528   ;;  %vm844_vm11 = vcmask 306328   ;;  %vm878_vm12 = vcmask 1043608  }
  0x23   :  { %1383 = vset.pattern.permute.xlu0 %v1528_v49  ;;  %1384 = vset.pattern.permute.xlu1 %v1528_v49  ;;  %843 = vst.msk [vmem:[#allocation2] sm:$0xf] %vm842_vm10, %v1528_v49  ;;  %vm879_vm13 = vcmask 1047556   ;;  %vm868_vm14 = vcmask 154624  }
  0x24   :  { %845 = vst.msk [vmem:[#allocation2 + $0x14] sm:$0xf] %vm844_vm11, %v1528_v49  ;;  %vm880_vm15 = vmor %vm879_vm13, %vm878_vm12  ;;  %vm1531_vm11 = vmmov 0   ;;  %vm1121_vm12 = vcmask 588800  }
  0x25   :  { %501 = vrot.lane.b32.xlu0 %v1612_v12, %s1521_s2  ;;  %497 = vrot.lane.b32.xlu1 %v1615_v13, %s1521_s2 }
  0x29   :  { %505 = vrot.lane.b32.xlu0 %v1630_v16, %s1521_s2  ;;  %507 = vrot.lane.b32.xlu1 %v1633_v17, %s1521_s2 }
  0x2d   :  { %321 = vrot.lane.b32.xlu0 %v1597_v8, %s1522_s30  ;;  %323 = vrot.lane.b32.xlu1 %v1612_v12, %s1522_s30 }
  0x31   :  { %302 = vrot.lane.b32.xlu0 %v1601_v9, %s1520_s1  ;;  %319 = vrot.lane.b32.xlu1 %v1615_v13, %s1522_s30 }
  0x35   :  { %270 = vrot.lane.b32.xlu0 %v1581_v4, %s1523_s6  ;;  %272 = vrot.lane.b32.xlu1 %v1577_v3, %s1523_s6 }
  0x39   :  { %287 = vrot.lane.b32.xlu0 %v1597_v8, %s1524_s7  ;;  %289 = vrot.lane.b32.xlu1 %v1612_v12, %s1524_s7 }
  0x3d   :  { %268 = vrot.lane.b32.xlu0 %v1601_v9, %s1523_s6  ;;  %285 = vrot.lane.b32.xlu1 %v1615_v13, %s1524_s7 }
  0x41   :  { %235 = vrot.lane.b32.xlu0 %v1581_v4, %s1521_s2  ;;  %237 = vrot.lane.b32.xlu1 %v1577_v3, %s1521_s2 }
  0x45   :  { %253 = vrot.lane.b32.xlu0 %v1597_v8, %s1525_s8  ;;  %255 = vrot.lane.b32.xlu1 %v1612_v12, %s1525_s8 }
  0x49   :  { %233 = vrot.lane.b32.xlu0 %v1601_v9, %s1521_s2  ;;  %251 = vrot.lane.b32.xlu1 %v1615_v13, %s1525_s8 }
  0x4d   :  { %208 = vrot.lane.b32.xlu1 %v1677_v20, %s1526_s13  ;;  %206 = vrot.lane.b32.xlu0 %v1679_v21, %s1526_s13 }
  0x51   :  { %308 = vrot.lane.b32.xlu1 %v1585_v5, %s1520_s1  ;;  %204 = vrot.lane.b32.xlu0 %v1685_v22, %s1526_s13 }
  0x55   :  { %325 = vrot.lane.b32.xlu1 %v1594_v7, %s1522_s30  ;;  %310 = vrot.lane.b32.xlu0 %v1619_v14, %s1520_s1 }
  0x59   :  { %170 = vrot.lane.b32.xlu1 %v1679_v21, %s1522_s30  ;;  %327 = vrot.lane.b32.xlu0 %v1630_v16, %s1522_s30 }
  0x5d   :  { %188 = vrot.lane.b32.xlu1 %v1679_v21, %s1527_s14  ;;  %172 = vrot.lane.b32.xlu0 %v1677_v20, %s1522_s30 }
  0x61   :  { %168 = vrot.lane.b32.xlu1 %v1685_v22, %s1522_s30  ;;  %190 = vrot.lane.b32.xlu0 %v1677_v20, %s1527_s14 }
  0x65   :  { %274 = vrot.lane.b32.xlu1 %v1585_v5, %s1523_s6  ;;  %186 = vrot.lane.b32.xlu0 %v1685_v22, %s1527_s14 }
  0x69   :  { %291 = vrot.lane.b32.xlu1 %v1594_v7, %s1524_s7  ;;  %276 = vrot.lane.b32.xlu0 %v1619_v14, %s1523_s6 }
  0x6d   :  { %134 = vrot.lane.b32.xlu1 %v1679_v21, %s1524_s7  ;;  %293 = vrot.lane.b32.xlu0 %v1630_v16, %s1524_s7 }
  0x71   :  { %152 = vrot.lane.b32.xlu1 %v1679_v21, %s1520_s1  ;;  %136 = vrot.lane.b32.xlu0 %v1677_v20, %s1524_s7 }
  0x75   :  { %132 = vrot.lane.b32.xlu1 %v1685_v22, %s1524_s7  ;;  %154 = vrot.lane.b32.xlu0 %v1677_v20, %s1520_s1 }
  0x79   :  { %239 = vrot.lane.b32.xlu1 %v1585_v5, %s1521_s2  ;;  %150 = vrot.lane.b32.xlu0 %v1685_v22, %s1520_s1 }
  0x7d   :  { %257 = vrot.lane.b32.xlu1 %v1594_v7, %s1525_s8  ;;  %241 = vrot.lane.b32.xlu0 %v1619_v14, %s1521_s2 }
  0x81   :  { %98 = vrot.lane.b32.xlu1 %v1679_v21, %s1525_s8  ;;  %259 = vrot.lane.b32.xlu0 %v1630_v16, %s1525_s8 }
  0x85   :  { %116 = vrot.lane.b32.xlu1 %v1679_v21, %s1523_s6  ;;  %100 = vrot.lane.b32.xlu0 %v1677_v20, %s1525_s8 }
  0x89   :  { %96 = vrot.lane.b32.xlu1 %v1685_v22, %s1525_s8  ;;  %118 = vrot.lane.b32.xlu0 %v1677_v20, %s1523_s6 }
  0x8d   :  { %210 = vrot.lane.b32.xlu1 %v1747_v23, %s1526_s13  ;;  %114 = vrot.lane.b32.xlu0 %v1685_v22, %s1523_s6 }
  0x8f   :  { %v1762_v26 = vpop.permute.xlu1 %306  ;;  %v305_v27 = vpop.permute.xlu0 %304 }
  0x90   :  { %v315_v40 = vsel %vm162_vm1, %v305_v27, %v1762_v26 }
  0x91   :  { %80 = vrot.lane.b32.xlu1 %v1679_v21, %s1521_s2  ;;  %212 = vrot.lane.b32.xlu0 %v1760_v25, %s1526_s13 }
  0x93   :  { %v1768_v28 = vpop.permute.xlu1 %503  ;;  %v500_v29 = vpop.permute.xlu0 %499 }
  0x95   :  { %78 = vrot.lane.b32.xlu1 %v1685_v22, %s1521_s2  ;;  %82 = vrot.lane.b32.xlu0 %v1677_v20, %s1521_s2 }
  0x97   :  { %v502_v30 = vpop.permute.xlu0 %501  ;;  %v498_v31 = vpop.permute.xlu1 %497 }
  0x98   :  { %v510_v34 = vsel %vm90_vm0, %v500_v29, %v502_v30  ;;  %v511_v35 = vsel %vm90_vm0, %v502_v30, %v1768_v28  ;;  %v509_v52 = vsel %vm90_vm0, %v498_v31, %v500_v29 }
  0x99   :  { %176 = vrot.lane.b32.xlu1 %v1760_v25, %s1522_s30  ;;  %174 = vrot.lane.b32.xlu0 %v1747_v23, %s1522_s30  ;;  %v522_v38 = vsel %vm336_vm2, %v1577_v3, %v511_v35  ;;  %v519_v39 = vsel %vm336_vm2, %v1581_v4, %v510_v34  ;;  %v516_v57 = vsel %vm336_vm2, %v1601_v9, %v509_v52 }
  0x9b   :  { %v1778_v32 = vpop.permute.xlu0 %505  ;;  %v1780_v33 = vpop.permute.xlu1 %507 }
  0x9d   :  { %194 = vrot.lane.b32.xlu1 %v1760_v25, %s1527_s14  ;;  %192 = vrot.lane.b32.xlu0 %v1747_v23, %s1527_s14 }
  0x9f   :  { %v322_v36 = vpop.permute.xlu0 %321  ;;  %v1789_v37 = vpop.permute.xlu1 %323 }
  0xa0   :  { %v332_v41 = vsel %vm180_vm3, %v322_v36, %v1789_v37 }
  0xa1   :  { %542 = vrot.lane.b32.xlu1 %v522_v38, %s1527_s14  ;;  %540 = vrot.lane.b32.xlu0 %v519_v39, %s1527_s14  ;;  %v483_v42 = vsel %vm336_vm2, %v315_v40, %v332_v41  ;;  %v512_v41 = vsel %vm90_vm0, %v1768_v28, %v1778_v32  ;;  %v513_v28 = vsel %vm90_vm0, %v1778_v32, %v1780_v33 }
  0xa2   :  { %603 = vmatprep.subr.bf16.mxu0 %v483_v42 }
  0xa3   :  { %v303_v44 = vpop.permute.xlu0 %302  ;;  %v320_v45 = vpop.permute.xlu1 %319 }
  0xa4   :  { %v314_v46 = vsel %vm162_vm1, %v303_v44, %v305_v27  ;;  %v331_v47 = vsel %vm180_vm3, %v320_v45, %v322_v36 }
  0xa5   :  { %140 = vrot.lane.b32.xlu1 %v1760_v25, %s1524_s7  ;;  %138 = vrot.lane.b32.xlu0 %v1747_v23, %s1524_s7  ;;  %v479_v48 = vsel %vm336_vm2, %v314_v46, %v331_v47  ;;  %v525_v47 = vsel %vm336_vm2, %v1585_v5, %v512_v41  ;;  %v528_v5 = vsel %vm336_vm2, %v1619_v14, %v513_v28 }
  0xa6   :  { %604 = vmatpush1.bf16.msra.mxu0 %v479_v48  ;;  %v1318_v48 = vcombine.high %v1752_v24, %v1752_v24 }
  0xa7   :  { %v271_v50 = vpop.permute.xlu0 %270  ;;  %v1816_v51 = vpop.permute.xlu1 %272 }
  0xa8   :  { %v281_v55 = vsel %vm126_vm5, %v271_v50, %v1816_v51 }
  0xa9   :  { %158 = vrot.lane.b32.xlu1 %v1760_v25, %s1520_s1  ;;  %156 = vrot.lane.b32.xlu0 %v1747_v23, %s1520_s1 }
  0xab   :  { %v288_v53 = vpop.permute.xlu0 %287  ;;  %v1824_v54 = vpop.permute.xlu1 %289 }
  0xac   :  { %v298_v56 = vsel %vm144_vm6, %v288_v53, %v1824_v54 }
  0xad   :  { %312 = vrot.lane.b32.xlu1 %v1623_v15, %s1520_s1  ;;  %538 = vrot.lane.b32.xlu0 %v516_v57, %s1527_s14  ;;  %v463_v58 = vsel %vm336_vm2, %v281_v55, %v298_v56 }
  0xae   :  { %605 = vmatprep.subr.bf16.mxu0 %v463_v58 }
  0xaf   :  { %v269_v59 = vpop.permute.xlu0 %268  ;;  %v286_v60 = vpop.permute.xlu1 %285 }
  0xb0   :  { %v280_v61 = vsel %vm126_vm5, %v269_v59, %v271_v50  ;;  %v297_v62 = vsel %vm144_vm6, %v286_v60, %v288_v53 }
  0xb1   :  { %102 = vrot.lane.b32.xlu1 %v1747_v23, %s1525_s8  ;;  %329 = vrot.lane.b32.xlu0 %v1633_v17, %s1522_s30  ;;  %v459_v63 = vsel %vm336_vm2, %v280_v61, %v297_v62 }
  0xb2   :  { %606 = vmatpush1.bf16.msra.mxu0 %v459_v63 }
  0xb3   :  { %v236_v3 = vpop.permute.xlu0 %235  ;;  %v1843_v4 = vpop.permute.xlu1 %237 }
  0xb4   :  { %v246_v19 = vsel %vm90_vm0, %v236_v3, %v1843_v4 }
  0xb5   :  { %120 = vrot.lane.b32.xlu1 %v1747_v23, %s1523_s6  ;;  %104 = vrot.lane.b32.xlu0 %v1760_v25, %s1525_s8 }
  0xb7   :  { %v254_v9 = vpop.permute.xlu0 %253  ;;  %v1849_v18 = vpop.permute.xlu1 %255 }
  0xb8   :  { %v264_v27 = vsel %vm108_vm7, %v254_v9, %v1849_v18 }
  0xb9   :  { %278 = vrot.lane.b32.xlu1 %v1623_v15, %s1523_s6  ;;  %122 = vrot.lane.b32.xlu0 %v1760_v25, %s1523_s6  ;;  %v443_v29 = vsel %vm336_vm2, %v246_v19, %v264_v27  ;;  %v531_v19 = vsel %vm336_vm2, %v1623_v15, %v1780_v33 }
  0xba   :  { %607 = vmatprep.subr.bf16.mxu0 %v443_v29  ;;  %v563_v29 = vld [vmem:[%s2438_s4] sm:$0xff] }
  0xbb   :  { %v234_v30 = vpop.permute.xlu0 %233  ;;  %v252_v31 = vpop.permute.xlu1 %251 }
  0xbc   :  { %v245_v34 = vsel %vm90_vm0, %v234_v30, %v236_v3  ;;  %v263_v35 = vsel %vm108_vm7, %v252_v31, %v254_v9 }
  0xbd   :  { %84 = vrot.lane.b32.xlu1 %v1747_v23, %s1521_s2  ;;  %295 = vrot.lane.b32.xlu0 %v1633_v17, %s1524_s7  ;;  %v439_v36 = vsel %vm336_vm2, %v245_v34, %v263_v35 }
  0xbe   :  { %608 = vmatpush1.bf16.msra.mxu0 %v439_v36 }
  0xbf   :  { %v1867_v38 = vpop.permute.xlu1 %208  ;;  %v207_v39 = vpop.permute.xlu0 %206 }
  0xc0   :  { %v218_v40 = vsel %vm216_vm8, %v207_v39, %v1867_v38 }
  0xc1   :  { %243 = vrot.lane.b32.xlu1 %v1623_v15, %s1521_s2  ;;  %86 = vrot.lane.b32.xlu0 %v1760_v25, %s1521_s2  ;;  %v423_v42 = vsel %vm336_vm2, %v218_v40, %v1597_v8 }
  0xc2   :  { %609 = vmatprep.subr.bf16.mxu0 %v423_v42 }
  0xc3   :  { %v309_v44 = vpop.permute.xlu1 %308  ;;  %v205_v45 = vpop.permute.xlu0 %204 }
  0xc4   :  { %v217_v46 = vsel %vm216_vm8, %v205_v45, %v207_v39  ;;  %v316_v55 = vsel %vm162_vm1, %v1762_v26, %v309_v44 }
  0xc5   :  { %544 = vrot.lane.b32.xlu1 %v525_v47, %s1527_s14  ;;  %261 = vrot.lane.b32.xlu0 %v1633_v17, %s1525_s8  ;;  %v419_v8 = vsel %vm336_vm2, %v217_v46, %v1615_v13 }
  0xc6   :  { %610 = vmatpush1.bf16.msra.mxu0 %v419_v8 }
  0xc7   :  { %v326_v50 = vpop.permute.xlu1 %325  ;;  %v1893_v52 = vpop.permute.xlu0 %310 }
  0xc8   :  { %v333_v13 = vsel %vm180_vm3, %v1789_v37, %v326_v50  ;;  %v317_v17 = vsel %vm162_vm1, %v309_v44, %v1893_v52 }
  0xc9   :  { %214 = vrot.lane.b32.xlu1 %v1318_v48, %s1526_s13  ;;  %546 = vrot.lane.b32.xlu0 %v528_v5, %s1527_s14  ;;  %v487_v56 = vsel %vm336_vm2, %v316_v55, %v333_v13 }
  0xcb   :  { %v171_v32 = vpop.permute.xlu1 %170  ;;  %v1899_v53 = vpop.permute.xlu0 %327 }
  0xcc   :  { %v334_v24 = vsel %vm180_vm3, %v326_v50, %v1899_v53 }
  0xcd   :  { %196 = vrot.lane.b32.xlu1 %v1318_v48, %s1527_s14  ;;  %178 = vrot.lane.b32.xlu0 %v1318_v48, %s1522_s30  ;;  %v491_v14 = vsel %vm336_vm2, %v317_v17, %v334_v24 }
  0xce   :  { %654 = vmatprep.subr.bf16.mxu1 %v491_v14 }
  0xcf   :  { %v189_v57 = vpop.permute.xlu1 %188  ;;  %655 = vmatpush1.bf16.msra.mxu1 %v487_v56  ;;  %v1913_v37 = vpop.permute.xlu0 %172 }
  0xd0   :  { %v182_v60 = vsel %vm180_vm3, %v171_v32, %v1913_v37 }
  0xd1   :  { %160 = vrot.lane.b32.xlu1 %v1318_v48, %s1520_s1  ;;  %142 = vrot.lane.b32.xlu0 %v1318_v48, %s1524_s7 }
  0xd3   :  { %v169_v58 = vpop.permute.xlu1 %168  ;;  %v1917_v59 = vpop.permute.xlu0 %190 }
  0xd4   :  { %v200_v26 = vsel %vm198_vm9, %v189_v57, %v1917_v59  ;;  %v181_v3 = vsel %vm180_vm3, %v169_v58, %v171_v32 }
  0xd5   :  { %124 = vrot.lane.b32.xlu1 %v1318_v48, %s1523_s6  ;;  %106 = vrot.lane.b32.xlu0 %v1318_v48, %s1525_s8  ;;  %v403_v61 = vsel %vm336_vm2, %v182_v60, %v200_v26 }
  0xd6   :  { %611 = vmatprep.subr.bf16.mxu0 %v403_v61 }
  0xd7   :  { %v275_v62 = vpop.permute.xlu1 %274  ;;  %v187_v63 = vpop.permute.xlu0 %186 }
  0xd8   :  { %v199_v9 = vsel %vm198_vm9, %v187_v63, %v189_v57  ;;  %v282_v39 = vsel %vm126_vm5, %v1816_v51, %v275_v62 }
  0xd9   :  { %548 = vrot.lane.b32.xlu1 %v531_v19, %s1527_s14  ;;  %88 = vrot.lane.b32.xlu0 %v1318_v48, %s1521_s2  ;;  %v399_v27 = vsel %vm336_vm2, %v181_v3, %v199_v9 }
  0xda   :  { %612 = vmatpush1.bf16.msra.mxu0 %v399_v27 }
  0xdb   :  { %v292_v30 = vpop.permute.xlu1 %291  ;;  %v1937_v31 = vpop.permute.xlu0 %276 }
  0xdc   :  { %v299_v15 = vsel %vm144_vm6, %v1824_v54, %v292_v30  ;;  %v283_v35 = vsel %vm126_vm5, %v275_v62, %v1937_v31 }
  0xdd   :  { %568 = vperm.xlu0 %1383, %v563_v29   ;;  %809 = vrot.lane.b32.xlu1 %v1587_v6, %s1524_s7  ;;  %v467_v6 = vsel %vm336_vm2, %v282_v39, %v299_v15 }
  0xdf   :  { %v135_v33 = vpop.permute.xlu1 %134  ;;  %v1943_v34 = vpop.permute.xlu0 %293 }
  0xe0   :  { %v300_v36 = vsel %vm144_vm6, %v292_v30, %v1943_v34 }
  0xe1   :  { %v471_v40 = vsel %vm336_vm2, %v283_v35, %v300_v36  ;;  %811 = vrot.lane.b32.xlu1 %v1571_v1, %s1524_s7  ;;  %813 = vrot.lane.b32.xlu0 %v1569_v0, %s1524_s7 }
  0xe2   :  { %656 = vmatprep.subr.bf16.mxu1 %v471_v40 }
  0xe3   :  { %v153_v54 = vpop.permute.xlu1 %152  ;;  %657 = vmatpush1.bf16.msra.mxu1 %v467_v6  ;;  %v1957_v41 = vpop.permute.xlu0 %136 }
  0xe4   :  { %v146_v1 = vsel %vm144_vm6, %v135_v33, %v1957_v41 }
  0xe5   :  { %815 = vrot.lane.b32.xlu1 %v1573_v2, %s1524_s7  ;;  %817 = vrot.lane.b32.xlu0 %v1603_v10, %s1524_s7 }
  0xe7   :  { %v133_v51 = vpop.permute.xlu1 %132  ;;  %v1963_v42 = vpop.permute.xlu0 %154 }
  0xe8   :  { %v164_v0 = vsel %vm162_vm1, %v153_v54, %v1963_v42  ;;  %v145_v46 = vsel %vm144_vm6, %v133_v51, %v135_v33 }
  0xe9   :  { %v383_v44 = vsel %vm336_vm2, %v146_v1, %v164_v0  ;;  %819 = vrot.lane.b32.xlu1 %v1605_v11, %s1524_s7 }
  0xea   :  { %613 = vmatprep.subr.bf16.mxu0 %v383_v44 }
  0xeb   :  { %v240_v45 = vpop.permute.xlu1 %239  ;;  %v151_v2 = vpop.permute.xlu0 %150 }
  0xec   :  { %v163_v10 = vsel %vm162_vm1, %v151_v2, %v153_v54  ;;  %v247_v13 = vsel %vm90_vm0, %v1843_v4, %v240_v45 }
  0xed   :  { %v379_v47 = vsel %vm336_vm2, %v145_v46, %v163_v10 }
  0xee   :  { %614 = vmatpush1.bf16.msra.mxu0 %v379_v47 }
  0xef   :  { %v258_v28 = vpop.permute.xlu1 %257  ;;  %v1975_v8 = vpop.permute.xlu0 %241 }
  0xf0   :  { %v265_v48 = vsel %vm108_vm7, %v1849_v18, %v258_v28  ;;  %v248_v11 = vsel %vm90_vm0, %v240_v45, %v1975_v8 }
  0xf1   :  { %v447_v24 = vsel %vm336_vm2, %v247_v13, %v265_v48  ;;  %v562_v13 = vld [vmem:[#allocation6 + $0x10] sm:$0xff] }
  0xf3   :  { %v99_v50 = vpop.permute.xlu1 %98  ;;  %v1979_v5 = vpop.permute.xlu0 %259 }
  0xf4   :  { %v266_v32 = vsel %vm108_vm7, %v258_v28, %v1979_v5 }
  0xf5   :  { %v451_v17 = vsel %vm336_vm2, %v248_v11, %v266_v32 }
  0xf6   :  { %658 = vmatprep.subr.bf16.mxu1 %v451_v17 }
  0xf7   :  { %v117_v14 = vpop.permute.xlu1 %116  ;;  %659 = vmatpush1.bf16.msra.mxu1 %v447_v24  ;;  %v1989_v18 = vpop.permute.xlu0 %100 }
  0xf8   :  { %v110_v57 = vsel %vm108_vm7, %v99_v50, %v1989_v18 }
  0xfb   :  { %v97_v55 = vpop.permute.xlu1 %96  ;;  %v1991_v56 = vpop.permute.xlu0 %118 }
  0xfc   :  { %v128_v58 = vsel %vm126_vm5, %v117_v14, %v1991_v56  ;;  %v109_v61 = vsel %vm108_vm7, %v97_v55, %v99_v50  ;;  %v2055_v55 = vcombine.high %v562_v13, %v562_v13 }
  0xfd   :  { %v363_v4 = vsel %vm336_vm2, %v110_v57, %v128_v58 }
  0xfe   :  { %615 = vmatprep.subr.bf16.mxu0 %v363_v4 }
  0xff   :  { %v211_v60 = vpop.permute.xlu1 %210  ;;  %v115_v26 = vpop.permute.xlu0 %114 }
 0x100   :  { %v127_v62 = vsel %vm126_vm5, %v115_v26, %v117_v14  ;;  %v219_v3 = vsel %vm216_vm8, %v1867_v38, %v211_v60  ;;  %v2053_v14 = vld [vmem:[#allocation6] ss:$8 sps:$4 sm:$0xff]  }
 0x101   :  { %v359_v63 = vsel %vm336_vm2, %v109_v61, %v127_v62  ;;  %v427_v30 = vsel %vm336_vm2, %v219_v3, %v1612_v12  ;;  %v2069_v62 = vcombine.low %v562_v13, %v562_v13 }
 0x102   :  { %616 = vmatpush1.bf16.msra.mxu0 %v359_v63 }
 0x103   :  { %v81_v9 = vpop.permute.xlu1 %80  ;;  %v2003_v19 = vpop.permute.xlu0 %212 }
 0x104   :  { %v220_v27 = vsel %vm216_vm8, %v211_v60, %v2003_v19 }
 0x105   :  { %v431_v29 = vsel %vm336_vm2, %v220_v27, %v1594_v7 }
 0x106   :  { %660 = vmatprep.subr.bf16.mxu1 %v431_v29 }
 0x107   :  { %v79_v15 = vpop.permute.xlu1 %78  ;;  %661 = vmatpush1.bf16.msra.mxu1 %v427_v30  ;;  %v2011_v33 = vpop.permute.xlu0 %82 }
 0x108   :  { %v91_v35 = vsel %vm90_vm0, %v79_v15, %v81_v9  ;;  %v92_v38 = vsel %vm90_vm0, %v81_v9, %v2011_v33 }
 0x109   :  { %v343_v36 = vsel %vm336_vm2, %v1679_v21, %v92_v38  ;;  %v339_v39 = vsel %vm336_vm2, %v1685_v22, %v91_v35 }
 0x10a   :  { %617 = vmatprep.subr.bf16.mxu0 %v343_v36 }
 0x10b   :  { %v2020_v7 = vpop.permute.xlu1 %176  ;;  %618 = vmatpush1.bf16.msra.mxu0 %v339_v39  ;;  %v175_v12 = vpop.permute.xlu0 %174 }
 0x10c   :  { %v183_v54 = vsel %vm180_vm3, %v1913_v37, %v175_v12  ;;  %v184_v51 = vsel %vm180_vm3, %v175_v12, %v2020_v7 }
 0x10f   :  { %v2022_v40 = vpop.permute.xlu1 %194  ;;  %v193_v6 = vpop.permute.xlu0 %192 }
 0x110   :  { %v201_v21 = vsel %vm198_vm9, %v1917_v59, %v193_v6  ;;  %v202_v22 = vsel %vm198_vm9, %v193_v6, %v2022_v40 }
 0x111   :  { %v411_v1 = vsel %vm336_vm2, %v184_v51, %v202_v22  ;;  %v407_v0 = vsel %vm336_vm2, %v183_v54, %v201_v21 }
 0x112   :  { %662 = vmatprep.subr.bf16.mxu1 %v411_v1 }
 0x113   :  { %v2034_v44 = vpop.permute.xlu1 %542  ;;  %663 = vmatpush1.bf16.msra.mxu1 %v407_v0  ;;  %v541_v45 = vpop.permute.xlu0 %540 }
 0x114   :  { %v551_v37 = vsel %vm198_vm9, %v541_v45, %v2034_v44 }
 0x115   :  { %633 = vmatprep.subr.bf16.mxu0 %v551_v37 }
 0x117   :  { %v2038_v2 = vpop.permute.xlu1 %140  ;;  %v139_v46 = vpop.permute.xlu0 %138 }
 0x118   :  { %v147_v47 = vsel %vm144_vm6, %v1957_v41, %v139_v46  ;;  %v148_v28 = vsel %vm144_vm6, %v139_v46, %v2038_v2 }
 0x11b   :  { %v2040_v59 = vpop.permute.xlu1 %158  ;;  %v157_v10 = vpop.permute.xlu0 %156 }
 0x11c   :  { %v165_v48 = vsel %vm162_vm1, %v1963_v42, %v157_v10  ;;  %v166_v50 = vsel %vm162_vm1, %v157_v10, %v2040_v59 }
 0x11d   :  { %v391_v11 = vsel %vm336_vm2, %v148_v28, %v166_v50  ;;  %v387_v32 = vsel %vm336_vm2, %v147_v47, %v165_v48 }
 0x11e   :  { %664 = vmatprep.subr.bf16.mxu1 %v391_v11 }
 0x11f   :  { %v313_v17 = vpop.permute.xlu1 %312  ;;  %665 = vmatpush1.bf16.msra.mxu1 %v387_v32  ;;  %v539_v24 = vpop.permute.xlu0 %538 }
 0x120   :  { %v550_v41 = vsel %vm198_vm9, %v539_v24, %v541_v45  ;;  %v318_v58 = vsel %vm162_vm1, %v1893_v52, %v313_v17 }
 0x121   :  { %634 = vmatpush2.bf16.msra.mxu0 %v550_v41 }
 0x122   :  { %705 = vmatprep.subr.bf16.mxu0 %v1528_v49 }
 0x123   :  { %v103_v42 = vpop.permute.xlu1 %102  ;;  %v330_v57 = vpop.permute.xlu0 %329 }
 0x124   :  { %v335_v4 = vsel %vm180_vm3, %v1899_v53, %v330_v57  ;;  %636 = vmatmul.mubr.bf16.vlgmr.msra.gmra.mxu0 %v2053_v14  ;;  %v111_v27 = vsel %vm108_vm7, %v1989_v18, %v103_v42 }
 0x125   :  { %v495_v60 = vsel %vm336_vm2, %v318_v58, %v335_v4  ;;  %1324 = vmatprep.mubr.msk.bf16.mxu0 %vm596_vm4, %v2055_v55 }
 0x126   :  { %706 = vmatpush1.bf16.msra.mxu0 %v495_v60 }
 0x127   :  { %v121_v26 = vpop.permute.xlu1 %120  ;;  %v2066_v61 = vpop.permute.xlu0 %104  ;;  %707 = vmatprep.subr.bf16.mxu0 %v1528_v49 }
 0x128   :  { %v129_v52 = vsel %vm126_vm5, %v1991_v56, %v121_v26  ;;  %v112_v3 = vsel %vm108_vm7, %v103_v42, %v2066_v61 }
 0x129   :  { %v367_v56 = vsel %vm336_vm2, %v111_v27, %v129_v52 }
 0x12b   :  { %v279_v63 = vpop.permute.xlu1 %278  ;;  %v123_v53 = vpop.permute.xlu0 %122 }
 0x12c   :  { %v130_v9 = vsel %vm126_vm5, %v121_v26, %v123_v53  ;;  %646 = vmatmul.mubr.bf16.gmra.mxu0 %v2069_v62  ;;  %v284_v35 = vsel %vm126_vm5, %v1937_v31, %v279_v63 }
 0x12d   :  { %v371_v29 = vsel %vm336_vm2, %v112_v3, %v130_v9  ;;  %1327 = vmatprep.mubr.msk.bf16.mxu0 %vm596_vm4, %v1802_v43 }
 0x12e   :  { %666 = vmatprep.subr.bf16.mxu1 %v371_v29 }
 0x12f   :  { %v85_v30 = vpop.permute.xlu1 %84  ;;  %667 = vmatpush1.bf16.msra.mxu1 %v367_v56  ;;  %v296_v15 = vpop.permute.xlu0 %295 }
 0x130   :  { %v301_v38 = vsel %vm144_vm6, %v1943_v34, %v296_v15  ;;  %v93_v18 = vsel %vm90_vm0, %v2011_v33, %v85_v30 }
 0x131   :  { %v475_v36 = vsel %vm336_vm2, %v284_v35, %v301_v38  ;;  %v347_v31 = vsel %vm336_vm2, %v1677_v20, %v93_v18 }
 0x132   :  { %708 = vmatpush1.bf16.msra.mxu0 %v475_v36 }
 0x133   :  { %v244_v39 = vpop.permute.xlu1 %243  ;;  %v87_v43 = vpop.permute.xlu0 %86  ;;  %709 = vmatprep.subr.bf16.mxu0 %v1528_v49 }
 0x134   :  { %v94_v12 = vsel %vm90_vm0, %v85_v30, %v87_v43  ;;  %v249_v51 = vsel %vm90_vm0, %v1975_v8, %v244_v39 }
 0x135   :  { %v351_v6 = vsel %vm336_vm2, %v1747_v23, %v94_v12 }
 0x136   :  { %668 = vmatprep.subr.bf16.mxu1 %v351_v6 }
 0x137   :  { %v545_v34 = vpop.permute.xlu1 %544  ;;  %669 = vmatpush1.bf16.msra.mxu1 %v347_v31  ;;  %v262_v54 = vpop.permute.xlu0 %261 }
 0x138   :  { %v267_v33 = vsel %vm108_vm7, %v1979_v5, %v262_v54  ;;  %v552_v0 = vsel %vm198_vm9, %v2034_v44, %v545_v34 }
 0x139   :  { %v455_v21 = vsel %vm336_vm2, %v249_v51, %v267_v33 }
 0x13a   :  { %710 = vmatpush1.bf16.msra.mxu0 %v455_v21 }
 0x13b   :  { %v215_v22 = vpop.permute.xlu1 %214  ;;  %v547_v1 = vpop.permute.xlu0 %546  ;;  %711 = vmatprep.subr.bf16.mxu0 %v1528_v49 }
 0x13c   :  { %v221_v23 = vsel %vm216_vm8, %v2003_v19, %v215_v22  ;;  %v553_v20 = vsel %vm198_vm9, %v545_v34, %v547_v1 }
 0x13d   :  { %684 = vmatprep.subr.bf16.mxu1 %v553_v20  ;;  %v435_v8 = vsel %vm336_vm2, %v221_v23, %v1630_v16 }
 0x13e   :  { %685 = vmatpush2.bf16.msra.mxu1 %v552_v0  ;;  %712 = vmatpush1.bf16.msra.mxu0 %v435_v8 }
 0x13f   :  { %v197_v5 = vpop.permute.xlu1 %196  ;;  %v179_v45 = vpop.permute.xlu0 %178  ;;  %713 = vmatprep.subr.bf16.mxu0 %v1528_v49 }
 0x140   :  { %v203_v37 = vsel %vm198_vm9, %v2022_v40, %v197_v5  ;;  %v185_v19 = vsel %vm180_vm3, %v2020_v7, %v179_v45 }
 0x141   :  { %687 = vmatmul.mubr.bf16.vlgmr.msra.gmra.mxu1 %v2053_v14  ;;  %v415_v46 = vsel %vm336_vm2, %v185_v19, %v203_v37 }
 0x142   :  { %714 = vmatpush1.bf16.msra.mxu0 %v415_v46  ;;  %1326 = vmatprep.mubr.msk.bf16.mxu1 %vm596_vm4, %v2055_v55 }
 0x143   :  { %v161_v16 = vpop.permute.xlu1 %160  ;;  %v143_v44 = vpop.permute.xlu0 %142  ;;  %715 = vmatprep.subr.bf16.mxu0 %v1528_v49 }
 0x144   :  { %v167_v10 = vsel %vm162_vm1, %v2040_v59, %v161_v16  ;;  %v149_v40 = vsel %vm144_vm6, %v2038_v2, %v143_v44 }
 0x145   :  { %v395_v7 = vsel %vm336_vm2, %v149_v40, %v167_v10 }
 0x146   :  { %716 = vmatpush1.bf16.msra.mxu0 %v395_v7 }
 0x147   :  { %v125_v47 = vpop.permute.xlu1 %124  ;;  %v107_v28 = vpop.permute.xlu0 %106  ;;  %717 = vmatprep.subr.bf16.mxu0 %v1528_v49 }
 0x148   :  { %v131_v48 = vsel %vm126_vm5, %v123_v53, %v125_v47  ;;  %v113_v50 = vsel %vm108_vm7, %v2066_v61, %v107_v28 }
 0x149   :  { %v375_v11 = vsel %vm336_vm2, %v113_v50, %v131_v48  ;;  %697 = vmatmul.mubr.bf16.gmra.mxu1 %v2069_v62 }
 0x14a   :  { %718 = vmatpush1.bf16.msra.mxu0 %v375_v11  ;;  %1172 = vmatprep.mubr.bf16.mxu1 %v1528_v49 }
 0x14b   :  { %v89_v2 = vpop.permute.xlu0 %88  ;;  %719 = vmatprep.subr.bf16.mxu0 %v1528_v49  ;;  %v549_v13 = vpop.permute.xlu1 %548 }
 0x14c   :  { %v95_v59 = vsel %vm90_vm0, %v87_v43, %v89_v2  ;;  %v554_v17 = vsel %vm198_vm9, %v547_v1, %v549_v13 }
 0x14d   :  { %v355_v32 = vsel %vm336_vm2, %v1760_v25, %v95_v59 }
 0x14e   :  { %720 = vmatpush1.bf16.msra.mxu0 %v355_v32 }
 0x14f   :  { %735 = vmatprep.subr.bf16.mxu0 %v1528_v49  ;;  %v810_v29 = vpop.permute.xlu1 %809 }
 0x152   :  { %736 = vmatpush2.bf16.msra.mxu0 %v554_v17 }
 0x153   :  { %v812_v35 = vpop.permute.xlu1 %811 }
 0x154   :  { %v2151_v12 = vsel %vm144_vm6, %v810_v29, %v812_v35 }
 0x155   :  { %738 = vmatmul.mubr.bf16.vlgmr.msra.gmra.mxu0 %v2053_v14 }
 0x156   :  { %1328 = vmatprep.mubr.msk.bf16.mxu0 %vm596_vm4, %v2055_v55  ;;  %vm883_vm4 = vcmask 154628  }
 0x157   :  { %v816_v44 = vpop.permute.xlu1 %815  ;;  %vm884_vm10 = vmor %vm883_vm4, %vm336_vm2 }
 0x158   :  { %v569_v24 = vpop.permute.xlu0 %568 }
 0x15b   :  { %v820_v59 = vpop.permute.xlu1 %819 }
 0x15c   :  { %v814_v18 = vpop.permute.xlu0 %813 }
 0x15d   :  { %746 = vmatmul.mubr.bf16.gmra.mxu0 %v2069_v62  ;;  %v2154_v34 = vsel %vm144_vm6, %v812_v35, %v814_v18  ;;  %v2165_v47 = vsel %vm144_vm6, %v814_v18, %v816_v44 }
 0x160   :  { %v818_v16 = vpop.permute.xlu0 %817 }
 0x161   :  { %v2162_v40 = vsel %vm144_vm6, %v816_v44, %v818_v16  ;;  %v2172_v13 = vsel %vm144_vm6, %v818_v16, %v820_v59 }
 0x1e4   :  { %v637_v41 = vpop.f32.mrf.mxu0 }
 0x1e5   :  { %v638_v25 = vadd.f32 %v637_v41, %v569_v24 }
 0x1e6   :  { %v639_v42 = vpop.f32.mrf.mxu0 }
 0x1e7   :  { %v640_v57 = vadd.f32 %v639_v42, %v569_v24  ;;  %v753_v58 = vsub.f32 0.0, %v638_v25 }
 0x1e8   :  { %v2142_v4 = vpop.f32.mrf.mxu0 }
 0x1e9   :  { %v754_v60 = vsub.f32 0.0, %v640_v57  ;;  %v763_v26 = vmul.f32 1.442695, %v753_v58 }
 0x1ea   :  { %v2144_v61 = vpop.f32.mrf.mxu0 }
 0x1eb   :  { %1400 = vpow2.f32 %v763_v26  ;;  %v765_v14 = vmul.f32 1.442695, %v754_v60 }
 0x1ec   :  { %v2146_v55 = vpop.f32.mrf.mxu0 }
 0x1ed   :  { %1402 = vpow2.f32 %v765_v14 }
 0x1ee   :  { %v2148_v62 = vpop.f32.mrf.mxu0 }
 0x1f0   :  { %v651_v52 = vpop.f32.mrf.mxu0 }
 0x1f2   :  { %v652_v63 = vpop.f32.mrf.mxu0 }
 0x1f8   :  { %v1401_v53 = vpop.eup %1400 }
 0x1f9   :  { %v783_v3 = vadd.f32 1.0, %v1401_v53 }
 0x1fa   :  { %v1403_v9 = vpop.eup %1402 }
 0x1fb   :  { %v784_v27 = vadd.f32 1.0, %v1403_v9  ;;  %1404 = vrcp.f32 %v783_v3 }
 0x1fd   :  { %1406 = vrcp.f32 %v784_v27 }
 0x201   :  { %v688_v56 = vpop.f32.mrf.mxu1 }
 0x202   :  { %v689_v30 = vadd.f32 %v688_v56, %v569_v24 }
 0x203   :  { %v690_v15 = vpop.f32.mrf.mxu1 }
 0x204   :  { %v755_v38 = vsub.f32 0.0, %v689_v30  ;;  %v691_v36 = vadd.f32 %v690_v15, %v569_v24 }
 0x206   :  { %v767_v39 = vmul.f32 1.442695, %v755_v38  ;;  %v756_v43 = vsub.f32 0.0, %v691_v36  ;;  %v1530_v38 = vmov 0.0   ;;  %v2265_v36 = vpop.f32.mrf.mxu1 }
 0x207   :  { %1352 = vmatprep.subr.bf16.mxu0 %v1530_v38  ;;  %1362 = vmatprep.mubr.msk.bf16.mxu0 %vm1531_vm11, %v1530_v38 }
 0x208   :  { %v1405_v6 = vpop.eup %1404  ;;  %1408 = vpow2.f32 %v767_v39  ;;  %v769_v31 = vmul.f32 1.442695, %v756_v43  ;;  %v2271_v18 = vpop.f32.mrf.mxu1 }
 0x209   :  { %v832_v54 = vmul.f32 %v1405_v6, %v2151_v12 }
 0x20a   :  { %v1407_v51 = vpop.eup %1406  ;;  %1410 = vpow2.f32 %v769_v31  ;;  %v2274_v39 = vpop.f32.mrf.mxu1 }
 0x20b   :  { %v833_v33 = vmul.f32 %v1407_v51, %v2154_v34 }
 0x20c   :  { %v2279_v6 = vpop.f32.mrf.mxu1 }
 0x20d   :  { %v1343_v21 = vpack.c.bf16 %v833_v33, %v832_v54 }
 0x20e   :  { %v702_v54 = vpop.f32.mrf.mxu1 }
 0x20f   :  { %859 = vrot.lane.b32.xlu0 %v1343_v21, %s1529_s18 }
 0x210   :  { %v703_v33 = vpop.f32.mrf.mxu1 }
 0x215   :  { %v1409_v22 = vpop.eup %1408  ;;  %v739_v1 = vpop.f32.mrf.mxu0 }
 0x216   :  { %v785_v23 = vadd.f32 1.0, %v1409_v22  ;;  %v740_v20 = vadd.f32 %v739_v1, %v569_v24  ;;  %v565_v22 = vld [vmem:[%s2438_s4 + $0x10] sm:$0xff]  ;;  %v564_v1 = vld [vmem:[%s2438_s4 + $0x8] sm:$0xff] }
 0x217   :  { %v1411_v0 = vpop.eup %1410  ;;  %v741_v8 = vpop.f32.mrf.mxu0 }
 0x218   :  { %1412 = vrcp.f32 %v785_v23  ;;  %v786_v5 = vadd.f32 1.0, %v1411_v0  ;;  %v757_v45 = vsub.f32 0.0, %v740_v20 }
 0x219   :  { %v2159_v37 = vpop.f32.mrf.mxu0 }
 0x21a   :  { %1414 = vrcp.f32 %v786_v5  ;;  %v771_v19 = vmul.f32 1.442695, %v757_v45 }
 0x21b   :  { %v744_v46 = vpop.f32.mrf.mxu0 }
 0x21c   :  { %1416 = vpow2.f32 %v771_v19 }
 0x21d   :  { %v2276_v43 = vpop.f32.mrf.mxu0 }
 0x21f   :  { %v749_v31 = vpop.f32.mrf.mxu0 }
 0x221   :  { %v750_v51 = vpop.f32.mrf.mxu0 }
 0x223   :  { %v751_v21 = vpop.f32.mrf.mxu0 }
 0x225   :  { %v1413_v10 = vpop.eup %1412 }
 0x226   :  { %v834_v28 = vmul.f32 %v1413_v10, %v2165_v47 }
 0x227   :  { %v1415_v7 = vpop.eup %1414 }
 0x228   :  { %v835_v48 = vmul.f32 %v1415_v7, %v2162_v40 }
 0x229   :  { %v1417_v50 = vpop.eup %1416 }
 0x22a   :  { %v787_v11 = vadd.f32 1.0, %v1417_v50  ;;  %v1344_v2 = vpack.c.bf16 %v835_v48, %v834_v28 }
 0x22c   :  { %1418 = vrcp.f32 %v787_v11  ;;  %861 = vrot.lane.b32.xlu1 %v1344_v2, %s1529_s18 }
 0x239   :  { %v1419_v32 = vpop.eup %1418 }
 0x23a   :  { %v836_v17 = vmul.f32 %v1419_v32, %v2172_v13 }
 0x23c   :  { %v1345_v24 = vpack.c.bf16 %v836_v17, %v836_v17 }
 0x23e   :  { %863 = vrot.lane.b32.xlu0 %v1345_v24, %s1529_s18 }
 0x281   :  { %v860_v41 = vpop.permute.xlu0 %859 }
 0x282   :  { %v865_v25 = vrot.slane %v860_v41, 4 }
 0x284   :  { %v869_v42 = vsel %vm868_vm14, %v865_v25, %v860_v41 }
 0x285   :  { %881 = vst.msk [vmem:[#allocation2] sm:$0xff] %vm880_vm15, %v869_v42 }
 0x28c   :  { %v886_v57 = vld [vmem:[#allocation2] sm:$0xff] }
 0x28d   :  { %v2177_v58 = vcombine.low %v886_v57, %v886_v57  ;;  %v2179_v60 = vcombine.high %v886_v57, %v886_v57 }
 0x28f   :  { %1025 = vrot.lane.b32.xlu0 %v2179_v60, %s1526_s13  ;;  %1023 = vrot.lane.b32.xlu1 %v2177_v58, %s1526_s13 }
 0x293   :  { %991 = vrot.lane.b32.xlu0 %v2179_v60, %s1522_s30  ;;  %1006 = vrot.lane.b32.xlu1 %v2177_v58, %s1527_s14 }
 0x297   :  { %1008 = vrot.lane.b32.xlu0 %v2179_v60, %s1527_s14  ;;  %972 = vrot.lane.b32.xlu1 %v2177_v58, %s1520_s1 }
 0x29b   :  { %989 = vrot.lane.b32.xlu0 %v2177_v58, %s1522_s30  ;;  %938 = vrot.lane.b32.xlu1 %v2177_v58, %s1523_s6 }
 0x29e   :  { %v862_v26 = vpop.permute.xlu1 %861 }
 0x29f   :  { %v866_v14 = vrot.slane %v862_v26, 4  ;;  %957 = vrot.lane.b32.xlu0 %v2179_v60, %s1524_s7 }
 0x2a1   :  { %v871_v52 = vsel %vm336_vm2, %v865_v25, %v866_v14 }
 0x2a2   :  { %v872_v63 = vsel %vm868_vm14, %v871_v52, %v862_v26 }
 0x2a3   :  { %v2201_v53 = vcombine.low %v872_v63, %v872_v63  ;;  %974 = vrot.lane.b32.xlu0 %v2179_v60, %s1520_s1  ;;  %v2232_v56 = vcombine.high %v872_v63, %v872_v63 }
 0x2a5   :  { %1027 = vrot.lane.b32.xlu1 %v2201_v53, %s1526_s13 }
 0x2a7   :  { %955 = vrot.lane.b32.xlu0 %v2177_v58, %s1524_s7 }
 0x2a9   :  { %993 = vrot.lane.b32.xlu1 %v2201_v53, %s1522_s30 }
 0x2ab   :  { %923 = vrot.lane.b32.xlu0 %v2179_v60, %s1525_s8 }
 0x2ad   :  { %1010 = vrot.lane.b32.xlu1 %v2201_v53, %s1527_s14 }
 0x2af   :  { %940 = vrot.lane.b32.xlu0 %v2179_v60, %s1523_s6 }
 0x2b0   :  { %v864_v3 = vpop.permute.xlu0 %863 }
 0x2b1   :  { %v867_v9 = vrot.slane %v864_v3, 4  ;;  %959 = vrot.lane.b32.xlu1 %v2201_v53, %s1524_s7 }
 0x2b3   :  { %v873_v27 = vsel %vm336_vm2, %v866_v14, %v867_v9  ;;  %921 = vrot.lane.b32.xlu0 %v2177_v58, %s1525_s8 }
 0x2b4   :  { %v874_v29 = vsel %vm868_vm14, %v873_v27, %v864_v3 }
 0x2b5   :  { %885 = vst.msk [vmem:[#allocation2 + $0x10] sm:$0xff] %vm884_vm10, %v874_v29  ;;  %976 = vrot.lane.b32.xlu1 %v2201_v53, %s1520_s1 }
 0x2b7   :  { %906 = vrot.lane.b32.xlu0 %v2179_v60, %s1521_s2 }
 0x2b9   :  { %925 = vrot.lane.b32.xlu1 %v2201_v53, %s1525_s8 }
 0x2bb   :  { %904 = vrot.lane.b32.xlu0 %v2177_v58, %s1521_s2 }
 0x2bc   :  { %v888_v30 = vld [vmem:[#allocation2 + $0x10] sm:$0xff] }
 0x2bd   :  { %942 = vrot.lane.b32.xlu1 %v2201_v53, %s1523_s6  ;;  %v1337_v15 = vcombine.high %v888_v30, %v888_v30  ;;  %v2249_v35 = vcombine.low %v888_v30, %v888_v30 }
 0x2bf   :  { %995 = vrot.lane.b32.xlu0 %v2232_v56, %s1522_s30 }
 0x2c1   :  { %908 = vrot.lane.b32.xlu1 %v2201_v53, %s1521_s2 }
 0x2c3   :  { %1012 = vrot.lane.b32.xlu0 %v2232_v56, %s1527_s14 }
 0x2c5   :  { %1029 = vrot.lane.b32.xlu1 %v2232_v56, %s1526_s13 }
 0x2c7   :  { %961 = vrot.lane.b32.xlu0 %v2232_v56, %s1524_s7 }
 0x2c9   :  { %1033 = vrot.lane.b32.xlu1 %v1337_v15, %s1526_s13 }
 0x2cb   :  { %978 = vrot.lane.b32.xlu0 %v2232_v56, %s1520_s1 }
 0x2cd   :  { %997 = vrot.lane.b32.xlu1 %v2249_v35, %s1522_s30 }
 0x2cf   :  { %927 = vrot.lane.b32.xlu0 %v2232_v56, %s1525_s8 }
 0x2d1   :  { %1014 = vrot.lane.b32.xlu1 %v2249_v35, %s1527_s14 }
 0x2d3   :  { %944 = vrot.lane.b32.xlu0 %v2232_v56, %s1523_s6 }
 0x2d5   :  { %1016 = vrot.lane.b32.xlu1 %v1337_v15, %s1527_s14 }
 0x2d7   :  { %1031 = vrot.lane.b32.xlu0 %v2249_v35, %s1526_s13 }
 0x2d9   :  { %963 = vrot.lane.b32.xlu1 %v2249_v35, %s1524_s7 }
 0x2db   :  { %910 = vrot.lane.b32.xlu0 %v2232_v56, %s1521_s2 }
 0x2dd   :  { %980 = vrot.lane.b32.xlu1 %v2249_v35, %s1520_s1 }
 0x2df   :  { %999 = vrot.lane.b32.xlu0 %v1337_v15, %s1522_s30 }
 0x2e1   :  { %982 = vrot.lane.b32.xlu1 %v1337_v15, %s1520_s1 }
 0x2e3   :  { %965 = vrot.lane.b32.xlu0 %v1337_v15, %s1524_s7 }
 0x2e5   :  { %929 = vrot.lane.b32.xlu1 %v2249_v35, %s1525_s8 }
 0x2e7   :  { %931 = vrot.lane.b32.xlu0 %v1337_v15, %s1525_s8 }
 0x2e9   :  { %946 = vrot.lane.b32.xlu1 %v2249_v35, %s1523_s6 }
 0x2eb   :  { %914 = vrot.lane.b32.xlu0 %v1337_v15, %s1521_s2 }
 0x2ed   :  { %948 = vrot.lane.b32.xlu1 %v1337_v15, %s1523_s6 }
 0x2ef   :  { %578 = vperm.xlu0 %1383, %v565_v22  }
 0x2f1   :  { %912 = vrot.lane.b32.xlu1 %v2249_v35, %s1521_s2 }
 0x2f5   :  { %573 = vperm.xlu1 %1384, %v564_v1  }
 0x301   :  { %v1024_v23 = vpop.permute.xlu1 %1023  ;;  %v1026_v20 = vpop.permute.xlu0 %1025 }
 0x302   :  { %v1035_v10 = vsel %vm216_vm8, %v1024_v23, %v1026_v20 }
 0x303   :  { %v1126_v48 = vsel %vm336_vm2, %v1035_v10, 0  ;;  %v2353_v10 = vld [vmem:[%s2437_s3] sm:$0xf]  ;;  %s1532_s3 = smov [#allocation8]  }
 0x304   :  { %s1303_s24 = sshll.u32 %s1532_s3, 4  ;;  %s1304_s24 = int_to_ptr.vmem [resolvable:$true] %s1303_s24 }
 0x305   :  { %v992_v0 = vpop.permute.xlu0 %991  ;;  %v1007_v8 = vpop.permute.xlu1 %1006  ;;  %s1490_s25 = scalar_lea.vmem %s1304_s24, 640  ;;  %p1495_p11 = scmp.lt.s32.totalorder %s1304_s24, %s1304_s24 }
 0x306   :  { %p1491_p10 = scmp.ne.s32.totalorder %s1304_s24, %s1490_s25  ;;  %p1496_p12 = scmp.lt.s32.totalorder %s1490_s25, %s1490_s25 }
 0x308   :  { %p1497_p13 = por %p1496_p12, %p1495_p11 }
 0x309   :  { %v1009_v5 = vpop.permute.xlu0 %1008  ;;  %v973_v45 = vpop.permute.xlu1 %972 }
 0x30a   :  { %v1018_v41 = vsel %vm198_vm9, %v1007_v8, %v1009_v5  ;;  %p1498_p0 = pnand %p1497_p13, %p1491_p10 }
 0x30d   :  { %v990_v19 = vpop.permute.xlu0 %989  ;;  %v939_v16 = vpop.permute.xlu1 %938 }
 0x30e   :  { %v1001_v59 = vsel %vm180_vm3, %v990_v19, %v992_v0 }
 0x30f   :  { %v1102_v57 = vsel %vm336_vm2, %v1001_v59, %v1018_v41 }
 0x311   :  { %v958_v46 = vpop.permute.xlu0 %957 }
 0x315   :  { %v975_v44 = vpop.permute.xlu0 %974 }
 0x316   :  { %v984_v27 = vsel %vm162_vm1, %v973_v45, %v975_v44 }
 0x317   :  { %v2299_v7 = vpop.permute.xlu1 %1027 }
 0x318   :  { %v1036_v28 = vsel %vm216_vm8, %v1026_v20, %v2299_v7 }
 0x319   :  { %v956_v50 = vpop.permute.xlu0 %955  ;;  %1338 = vmatprep.subr.msk.bf16.mxu1 %vm336_vm2, %v1036_v28 }
 0x31a   :  { %1147 = vmatpush1.bf16.msra.mxu1 %v1126_v48  ;;  %v967_v52 = vsel %vm144_vm6, %v956_v50, %v958_v46 }
 0x31b   :  { %v2305_v11 = vpop.permute.xlu1 %993  ;;  %v1082_v15 = vsel %vm336_vm2, %v967_v52, %v984_v27 }
 0x31c   :  { %v1002_v17 = vsel %vm180_vm3, %v992_v0, %v2305_v11 }
 0x31d   :  { %v924_v2 = vpop.permute.xlu0 %923 }
 0x31f   :  { %v2308_v32 = vpop.permute.xlu1 %1010 }
 0x320   :  { %v1019_v24 = vsel %vm198_vm9, %v1009_v5, %v2308_v32 }
 0x321   :  { %v941_v25 = vpop.permute.xlu0 %940  ;;  %v1106_v42 = vsel %vm336_vm2, %v1002_v17, %v1019_v24 }
 0x322   :  { %1148 = vmatprep.subr.bf16.mxu1 %v1106_v42  ;;  %v950_v1 = vsel %vm126_vm5, %v939_v16, %v941_v25 }
 0x323   :  { %v2317_v26 = vpop.permute.xlu1 %959  ;;  %1149 = vmatpush1.bf16.msra.mxu1 %v1102_v57 }
 0x324   :  { %v968_v3 = vsel %vm144_vm6, %v958_v46, %v2317_v26 }
 0x325   :  { %v922_v14 = vpop.permute.xlu0 %921 }
 0x326   :  { %v933_v51 = vsel %vm108_vm7, %v922_v14, %v924_v2 }
 0x327   :  { %v2320_v63 = vpop.permute.xlu1 %976  ;;  %v1062_v0 = vsel %vm336_vm2, %v933_v51, %v950_v1 }
 0x328   :  { %v985_v9 = vsel %vm162_vm1, %v975_v44, %v2320_v63 }
 0x329   :  { %v907_v29 = vpop.permute.xlu0 %906  ;;  %v1086_v30 = vsel %vm336_vm2, %v968_v3, %v985_v9 }
 0x32a   :  { %1150 = vmatprep.subr.bf16.mxu1 %v1086_v30 }
 0x32b   :  { %v2329_v31 = vpop.permute.xlu1 %925  ;;  %1151 = vmatpush1.bf16.msra.mxu1 %v1082_v15 }
 0x32c   :  { %v934_v21 = vsel %vm108_vm7, %v924_v2, %v2329_v31 }
 0x32d   :  { %v905_v54 = vpop.permute.xlu0 %904 }
 0x32e   :  { %v916_v8 = vsel %vm90_vm0, %v905_v54, %v907_v29 }
 0x32f   :  { %v2332_v33 = vpop.permute.xlu1 %942  ;;  %v1042_v16 = vsel %vm336_vm2, %v2177_v58, %v916_v8 }
 0x330   :  { %v951_v22 = vsel %vm126_vm5, %v941_v25, %v2332_v33 }
 0x331   :  { %v996_v23 = vpop.permute.xlu0 %995  ;;  %v1066_v20 = vsel %vm336_vm2, %v934_v21, %v951_v22 }
 0x332   :  { %1152 = vmatprep.subr.bf16.mxu1 %v1066_v20 }
 0x333   :  { %v2342_v5 = vpop.permute.xlu1 %908  ;;  %1153 = vmatpush1.bf16.msra.mxu1 %v1062_v0 }
 0x334   :  { %v917_v45 = vsel %vm90_vm0, %v907_v29, %v2342_v5  ;;  %v1003_v29 = vsel %vm180_vm3, %v2305_v11, %v996_v23 }
 0x335   :  { %v1013_v19 = vpop.permute.xlu0 %1012  ;;  %v1046_v46 = vsel %vm336_vm2, %v2179_v60, %v917_v45 }
 0x336   :  { %1154 = vmatprep.subr.bf16.mxu1 %v1046_v46  ;;  %v1020_v9 = vsel %vm198_vm9, %v2308_v32, %v1013_v19 }
 0x337   :  { %v1030_v44 = vpop.permute.xlu1 %1029  ;;  %1155 = vmatpush1.bf16.msra.mxu1 %v1042_v16  ;;  %v1110_v30 = vsel %vm336_vm2, %v1003_v29, %v1020_v9 }
 0x338   :  { %v1037_v24 = vsel %vm216_vm8, %v2299_v7, %v1030_v44 }
 0x339   :  { %v962_v28 = vpop.permute.xlu0 %961  ;;  %v1132_v14 = vsel %vm336_vm2, %v1037_v24, 0 }
 0x33a   :  { %1339 = vmatmul.mubr.msk.bf16.vlgmr.msra.gmra.mxu1 %vm1121_vm12, %v2353_v10  ;;  %v969_v1 = vsel %vm144_vm6, %v2317_v26, %v962_v28 }
 0x33b   :  { %v1034_v48 = vpop.permute.xlu1 %1033  ;;  %1213 = vmatprep.mubr.bf16.mxu1 %v1528_v49 }
 0x33d   :  { %v979_v60 = vpop.permute.xlu0 %978 }
 0x33e   :  { %v986_v54 = vsel %vm162_vm1, %v2320_v63, %v979_v60 }
 0x33f   :  { %v998_v50 = vpop.permute.xlu1 %997  ;;  %v1090_v63 = vsel %vm336_vm2, %v969_v1, %v986_v54 }
 0x340   :  { %v1004_v49 = vsel %vm180_vm3, %v996_v23, %v998_v50 }
 0x341   :  { %v928_v2 = vpop.permute.xlu0 %927 }
 0x343   :  { %v1015_v59 = vpop.permute.xlu1 %1014 }
 0x344   :  { %v1021_v25 = vsel %vm198_vm9, %v1013_v19, %v1015_v59 }
 0x345   :  { %v945_v58 = vpop.permute.xlu0 %944  ;;  %v1114_v7 = vsel %vm336_vm2, %v1004_v49, %v1021_v25 }
 0x346   :  { %v952_v16 = vsel %vm126_vm5, %v2332_v33, %v945_v58 }
 0x347   :  { %v1017_v17 = vpop.permute.xlu1 %1016 }
 0x348   :  { %v1022_v20 = vsel %vm198_vm9, %v1015_v59, %v1017_v17 }
 0x349   :  { %v1032_v41 = vpop.permute.xlu0 %1031 }
 0x34a   :  { %v1038_v42 = vsel %vm216_vm8, %v1030_v44, %v1032_v41  ;;  %v1039_v57 = vsel %vm216_vm8, %v1032_v41, %v1034_v48 }
 0x34b   :  { %v1138_v52 = vsel %vm336_vm2, %v1039_v57, 0  ;;  %1340 = vmatprep.subr.msk.bf16.mxu1 %vm336_vm2, %v1038_v42  ;;  %v964_v3 = vpop.permute.xlu1 %963 }
 0x34c   :  { %1188 = vmatpush1.bf16.msra.mxu1 %v1132_v14  ;;  %1353 = vmatpush3.bf16.msra.mxu0 %v1138_v52  ;;  %v970_v32 = vsel %vm144_vm6, %v962_v28, %v964_v3 }
 0x34d   :  { %v911_v27 = vpop.permute.xlu0 %910  ;;  %1189 = vmatprep.subr.bf16.mxu1 %v1114_v7  ;;  %1354 = vmatprep.subr.bf16.mxu0 %v1530_v38 }
 0x34f   :  { %v981_v15 = vpop.permute.xlu1 %980 }
 0x350   :  { %1190 = vmatpush1.bf16.msra.mxu1 %v1110_v30  ;;  %v987_v51 = vsel %vm162_vm1, %v979_v60, %v981_v15  ;;  %v935_v60 = vsel %vm108_vm7, %v2329_v31, %v928_v2 }
 0x351   :  { %v1000_v21 = vpop.permute.xlu0 %999  ;;  %v1094_v22 = vsel %vm336_vm2, %v970_v32, %v987_v51  ;;  %v1070_v17 = vsel %vm336_vm2, %v935_v60, %v952_v16 }
 0x352   :  { %v1005_v11 = vsel %vm180_vm3, %v998_v50, %v1000_v21  ;;  %1191 = vmatprep.subr.bf16.mxu1 %v1094_v22 }
 0x353   :  { %v1118_v23 = vsel %vm336_vm2, %v1005_v11, %v1022_v20  ;;  %v983_v0 = vpop.permute.xlu1 %982 }
 0x354   :  { %1355 = vmatpush3.bf16.msra.mxu0 %v1118_v23  ;;  %1192 = vmatpush1.bf16.msra.mxu1 %v1090_v63  ;;  %v988_v19 = vsel %vm162_vm1, %v981_v15, %v983_v0 }
 0x355   :  { %v966_v8 = vpop.permute.xlu0 %965  ;;  %1356 = vmatprep.subr.bf16.mxu0 %v1530_v38 }
 0x356   :  { %v971_v45 = vsel %vm144_vm6, %v964_v3, %v966_v8 }
 0x357   :  { %v1098_v26 = vsel %vm336_vm2, %v971_v45, %v988_v19  ;;  %v930_v46 = vpop.permute.xlu1 %929 }
 0x358   :  { %1357 = vmatpush3.bf16.msra.mxu0 %v1098_v26  ;;  %v936_v28 = vsel %vm108_vm7, %v928_v2, %v930_v46 }
 0x359   :  { %1358 = vmatprep.subr.bf16.mxu0 %v1530_v38  ;;  %v932_v50 = vpop.permute.xlu0 %931 }
 0x35a   :  { %v937_v41 = vsel %vm108_vm7, %v930_v46, %v932_v50 }
 0x35b   :  { %v947_v44 = vpop.permute.xlu1 %946 }
 0x35c   :  { %v953_v48 = vsel %vm126_vm5, %v945_v58, %v947_v44  ;;  %v918_v58 = vsel %vm90_vm0, %v2342_v5, %v911_v27 }
 0x35d   :  { %v1074_v59 = vsel %vm336_vm2, %v936_v28, %v953_v48  ;;  %v915_v42 = vpop.permute.xlu0 %914  ;;  %v1050_v52 = vsel %vm336_vm2, %v2201_v53, %v918_v58 }
 0x35e   :  { %1193 = vmatprep.subr.bf16.mxu1 %v1074_v59 }
 0x35f   :  { %v949_v24 = vpop.permute.xlu1 %948  ;;  %1194 = vmatpush1.bf16.msra.mxu1 %v1070_v17 }
 0x360   :  { %v954_v33 = vsel %vm126_vm5, %v947_v44, %v949_v24 }
 0x361   :  { %v1078_v25 = vsel %vm336_vm2, %v937_v41, %v954_v33 }
 0x362   :  { %1359 = vmatpush3.bf16.msra.mxu0 %v1078_v25 }
 0x363   :  { %v913_v31 = vpop.permute.xlu1 %912  ;;  %1360 = vmatprep.subr.bf16.mxu0 %v1530_v38 }
 0x364   :  { %v919_v2 = vsel %vm90_vm0, %v911_v27, %v913_v31  ;;  %v920_v57 = vsel %vm90_vm0, %v913_v31, %v915_v42 }
 0x365   :  { %v1054_v14 = vsel %vm336_vm2, %v2232_v56, %v919_v2  ;;  %v1058_v49 = vsel %vm336_vm2, %v2249_v35, %v920_v57 }
 0x366   :  { %1195 = vmatprep.subr.bf16.mxu1 %v1054_v14  ;;  %1361 = vmatpush3.bf16.msra.mxu0 %v1058_v49 }
 0x367   :  { %1196 = vmatpush1.bf16.msra.mxu1 %v1050_v52 }
 0x369   :  { %1363 = vmatmul.mubr.msk.bf16.vlgmr.msra.gmra.mxu0 %vm1121_vm12, %v2353_v10 }
 0x36a   :  { %1341 = vmatmul.mubr.msk.bf16.vlgmr.msra.gmra.mxu1 %vm1121_vm12, %v2353_v10  ;;  %v579_v15 = vpop.permute.xlu0 %578 }
 0x36b   :  { %v648_v10 = vadd.f32 %v2146_v55, %v579_v15  ;;  %v699_v25 = vadd.f32 %v2274_v39, %v579_v15  ;;  %v701_v57 = vadd.f32 %v2279_v6, %v579_v15 }
 0x370   :  { %v574_v38 = vpop.permute.xlu1 %573 }
 0x371   :  { %v642_v5 = vadd.f32 %v2142_v4, %v574_v38  ;;  %v644_v56 = vadd.f32 %v2144_v61, %v574_v38  ;;  %v650_v4 = vadd.f32 %v2148_v62, %v579_v15  ;;  %v743_v11 = vadd.f32 %v2159_v37, %v574_v38 }
 0x372   :  { %v693_v23 = vadd.f32 %v2265_v36, %v574_v38  ;;  %v695_v63 = vadd.f32 %v2271_v18, %v574_v38 }
 0x373   :  { %v758_v3 = vsub.f32 0.0, %v642_v5  ;;  %v759_v9 = vsub.f32 0.0, %v644_v56  ;;  %v762_v45 = vsub.f32 0.0, %v743_v11 }
 0x374   :  { %v760_v19 = vsub.f32 0.0, %v693_v23  ;;  %v761_v16 = vsub.f32 0.0, %v695_v63 }
 0x375   :  { %v773_v35 = vmul.f32 1.442695, %v758_v3  ;;  %v775_v7 = vmul.f32 1.442695, %v759_v9  ;;  %v781_v60 = vmul.f32 1.442695, %v762_v45 }
 0x376   :  { %v777_v37 = vmul.f32 1.442695, %v760_v19  ;;  %v779_v36 = vmul.f32 1.442695, %v761_v16 }
 0x377   :  { %1420 = vpow2.f32 %v773_v35 }
 0x378   :  { %1422 = vpow2.f32 %v775_v7 }
 0x384   :  { %v1421_v27 = vpop.eup %1420 }
 0x385   :  { %v1423_v53 = vpop.eup %1422  ;;  %v788_v29 = vadd.f32 1.0, %v1421_v27 }
 0x386   :  { %v789_v30 = vadd.f32 1.0, %v1423_v53 }
 0x387   :  { %1424 = vrcp.f32 %v788_v29 }
 0x388   :  { %1426 = vrcp.f32 %v789_v30 }
 0x394   :  { %v1425_v1 = vpop.eup %1424 }
 0x395   :  { %v1427_v20 = vpop.eup %1426  ;;  %v1272_v0 = vsub.f32 1.0, %v1425_v1 }
 0x396   :  { %v1273_v55 = vsub.f32 1.0, %v1427_v20 }
 0x397   :  { %v1277_v26 = vmul.f32 %v1272_v0, %v2151_v12 }
 0x398   :  { %v1278_v28 = vmul.f32 %v1273_v55, %v2154_v34  ;;  %v748_v34 = vadd.f32 %v2276_v43, %v579_v15 }
 0x3fa   :  { %v1174_v54 = vpop.f32.mrf.mxu1 }
 0x3fb   :  { %v1262_v32 = vadd.f32 %v1174_v54, %v648_v10 }
 0x3fc   :  { %v1176_v61 = vpop.f32.mrf.mxu1 }
 0x3fd   :  { %1428 = vtanh.f32 %v1262_v32  ;;  %v1263_v51 = vadd.f32 %v1176_v61, %v650_v4 }
 0x3fe   :  { %v1178_v21 = vpop.f32.mrf.mxu1 }
 0x3ff   :  { %1430 = vtanh.f32 %v1263_v51 }
 0x400   :  { %v1179_v22 = vpop.f32.mrf.mxu1  ;;  %1432 = vpow2.f32 %v781_v60 }
 0x401   :  { %1434 = vpow2.f32 %v777_v37 }
 0x402   :  { %1436 = vpow2.f32 %v779_v36 }
 0x40a   :  { %v1429_v8 = vpop.eup %1428 }
 0x40b   :  { %v1282_v62 = vmul.f32 %v1429_v8, %v1425_v1 }
 0x40c   :  { %v1431_v46 = vpop.eup %1430 }
 0x40d   :  { %v1283_v44 = vmul.f32 %v1431_v46, %v1427_v20  ;;  %v1287_v48 = vadd.f32 %v1282_v62, %v1277_v26  ;;  %v1433_v18 = vpop.eup %1432 }
 0x40e   :  { %v1435_v59 = vpop.eup %1434  ;;  %v792_v24 = vadd.f32 1.0, %v1433_v18 }
 0x40f   :  { %v1288_v50 = vadd.f32 %v1283_v44, %v1278_v28  ;;  %1292 = vst [vmem:[#allocation8] sm:$0xff] %v1287_v48  ;;  %v1437_v17 = vpop.eup %1436  ;;  %v790_v12 = vadd.f32 1.0, %v1435_v59 }
 0x410   :  { %v791_v41 = vadd.f32 1.0, %v1437_v17  ;;  %1438 = vrcp.f32 %v792_v24 }
 0x411   :  { %1293 = vst [vmem:[#allocation8 + $0x8] sm:$0xff] %v1288_v50  ;;  %1440 = vrcp.f32 %v790_v12 }
 0x412   :  { %1442 = vrcp.f32 %v791_v41 }
 0x41d   :  { %v1439_v43 = vpop.eup %1438 }
 0x41e   :  { %v1441_v3 = vpop.eup %1440  ;;  %v1276_v35 = vsub.f32 1.0, %v1439_v43 }
 0x41f   :  { %v1443_v9 = vpop.eup %1442  ;;  %v1274_v39 = vsub.f32 1.0, %v1441_v3 }
 0x420   :  { %v1275_v27 = vsub.f32 1.0, %v1443_v9  ;;  %v1281_v6 = vmul.f32 %v1276_v35, %v2172_v13 }
 0x421   :  { %v1279_v15 = vmul.f32 %v1274_v39, %v2165_v47 }
 0x422   :  { %v1280_v4 = vmul.f32 %v1275_v27, %v2162_v40 }
 0x429   :  { %v1256_v33 = vpop.f32.mrf.mxu0 }
 0x42a   :  { %v1266_v58 = vadd.f32 %v1256_v33, %v748_v34  ;;  %v1215_v42 = vpop.f32.mrf.mxu1 }
 0x42b   :  { %v1264_v31 = vadd.f32 %v1215_v42, %v699_v25  ;;  %v1364_v2 = vpop.f32.mrf.mxu0 }
 0x42c   :  { %1444 = vtanh.f32 %v1266_v58  ;;  %v1217_v14 = vpop.f32.mrf.mxu1 }
 0x42d   :  { %1446 = vtanh.f32 %v1264_v31  ;;  %v1265_v49 = vadd.f32 %v1217_v14, %v701_v57  ;;  %v1259_v52 = vpop.f32.mrf.mxu0 }
 0x42e   :  { %v1219_v38 = vpop.f32.mrf.mxu1 }
 0x42f   :  { %1448 = vtanh.f32 %v1265_v49  ;;  %v1365_v5 = vpop.f32.mrf.mxu0 }
 0x430   :  { %v1220_v56 = vpop.f32.mrf.mxu1 }
 0x439   :  { %v1445_v7 = vpop.eup %1444 }
 0x43a   :  { %v1447_v53 = vpop.eup %1446  ;;  %v1286_v29 = vmul.f32 %v1445_v7, %v1439_v43 }
 0x43b   :  { %v1284_v30 = vmul.f32 %v1447_v53, %v1441_v3 }
 0x43c   :  { %v1449_v10 = vpop.eup %1448  ;;  %v1291_v54 = vadd.f32 %v1286_v29, %v1281_v6 }
 0x43d   :  { %v1285_v32 = vmul.f32 %v1449_v10, %v1443_v9  ;;  %v1289_v61 = vadd.f32 %v1284_v30, %v1279_v15 }
 0x43e   :  { %1296 = vst [vmem:[#allocation8 + $0x20] sm:$0xff] %v1291_v54 }
 0x43f   :  { %v1290_v51 = vadd.f32 %v1285_v32, %v1280_v4  ;;  %1294 = vst [vmem:[#allocation8 + $0x10] sm:$0xff] %v1289_v61 }
 0x441   :  { %1295 = vst [vmem:[#allocation8 + $0x18] sm:$0xff] %v1290_v51 }
 0x442   :  { %1501 = shalt.err (!%p1498_p0)
}
 0x443   :  { %1306 = dma.vmem_to_hbm [thread:$0]  %s1304_s24, 640, %s2439_s5, [#allocation5]  }
 0x444   :  { %1514 = dma.done.wait [#allocation5], 640  }
 0x445   :  { %1515 = vsyncadd [#allocation5], 4294966656 }
 0x446   :  { %1310 = vsyncpa [#allocation4], 1 }
 0x447   :  { %1311 = vsyncpa [#allocation7], 1 }
 0x448   :  { %1312 = vsyncpa [#allocation5], 1 }

</bundles_post_ra>
